<compile_context>
chip_gen: v7x
topology: tpu7x:2x2x1
jax: 0.10.0
libtpu: 0.0.40
codegen_flags: <defaults>
</compile_context>

<pallas_src>
import functools
import math

import jax
import jax.numpy as jnp
import numpy as np
from jax.experimental import pallas as pl
from jax.experimental.pallas import tpu as pltpu


# ---------------------------------------------------------------------------
# Fused kernel
# ---------------------------------------------------------------------------
def _gcn2_fused_kernel(x_ref, a_ref, w0_ref, b0_ref, ws_ref, w1_ref, b1_ref,
                       o_ref, *, alpha, num_layers, num_classes):
    # lin0 + relu  (padded hidden columns stay exactly zero)
    x0 = jnp.dot(x_ref[...], w0_ref[...], preferred_element_type=jnp.float32)
    x0 = jnp.maximum(x0 + b0_ref[...], 0.0)

    # prologue: fold alpha into x0 once (reused by every layer)
    ax0 = jnp.float32(alpha) * x0
    a = a_ref[...]                      # already (1 - alpha) * A

    # GCN2 layers: h = A'@x + alpha*x0 ; x = relu(h @ W'_l)   (beta folded in W')
    x = x0
    for l in range(num_layers):         # static unroll (L is small)
        h = jnp.dot(a, x, preferred_element_type=jnp.float32) + ax0
        x = jnp.maximum(
            jnp.dot(h, ws_ref[l], preferred_element_type=jnp.float32), 0.0)

    # lin1 + masked, max-stabilized log_softmax over the real classes only
    z = jnp.dot(x, w1_ref[...], preferred_element_type=jnp.float32) + b1_ref[...]
    cols = jax.lax.broadcasted_iota(jnp.int32, z.shape, dimension=1)
    z = jnp.where(cols < num_classes, z, jnp.float32(-1e30))
    m = jnp.max(z, axis=-1, keepdims=True)
    lse = jnp.log(jnp.sum(jnp.exp(z - m), axis=-1, keepdims=True)) + m
    o_ref[...] = z - lse


def _full_spec(shape):
    return pl.BlockSpec(shape, lambda i: (0,) * len(shape))


def _round_up(v, m):
    return ((v + m - 1) // m) * m


# ---------------------------------------------------------------------------
# Full network forward (single pallas_call)
# ---------------------------------------------------------------------------
def net_forward(params, x, adj, *, alpha, theta):
    # dropout(p=0.0, training=False) -> identity, skipped.
    n, f = x.shape
    h = params["lin0_w"].shape[1]
    c = params["lin1_w"].shape[1]
    num_layers = len(params["conv_ws"])
    hp = max(_round_up(h, 128), 128)    # lane-dense hidden width
    cp = max(_round_up(c, 128), 128)    # lane-dense class width

    # ---- trace-time prep (fp32): fold scalars, zero-pad to lane-dense widths.
    adj_s = ((1.0 - alpha) * adj).astype(jnp.float32)
    w0p = jnp.zeros((f, hp), jnp.float32).at[:, :h].set(params["lin0_w"])
    b0p = jnp.zeros((1, hp), jnp.float32).at[:, :h].set(params["lin0_b"])
    eye = jnp.eye(hp, dtype=jnp.float32)
    folded = []
    for l, w in enumerate(params["conv_ws"], start=1):
        beta = math.log(theta / l + 1.0)
        wp = jnp.zeros((hp, hp), jnp.float32).at[:h, :h].set(w)
        folded.append((1.0 - beta) * eye + beta * wp)   # exact fp32 fold
    wsp = jnp.stack(folded, axis=0)                     # [L, hp, hp]
    w1p = jnp.zeros((hp, cp), jnp.float32).at[:h, :c].set(params["lin1_w"])
    b1p = jnp.zeros((1, cp), jnp.float32).at[:, :c].set(params["lin1_b"])

    kern = functools.partial(_gcn2_fused_kernel, alpha=float(alpha),
                             num_layers=num_layers, num_classes=c)
    out_p = pl.pallas_call(
        kern,
        out_shape=jax.ShapeDtypeStruct((n, cp), jnp.float32),
        grid=(1,),
        in_specs=[
            _full_spec((n, f)),
            _full_spec((n, n)),
            _full_spec((f, hp)),
            _full_spec((1, hp)),
            _full_spec((num_layers, hp, hp)),
            _full_spec((hp, cp)),
            _full_spec((1, cp)),
        ],
        out_specs=_full_spec((n, cp)),
        compiler_params=pltpu.CompilerParams(
            dimension_semantics=("arbitrary",)),
    )(x.astype(jnp.float32), adj_s, w0p, b0p, wsp, w1p, b1p)
    # TODO(synk): for real Cora sizes (N~2708, F~1433) re-derive row-tiled
    # BlockSpecs + vmem_limit_bytes; the full-extent-block design here assumes
    # the whole graph fits in VMEM (true at these demo shapes).
    return out_p[:, :c]


def net_forward_ref(params, x, adj, *, alpha, theta):
    # pure-JAX reference for sanity checking
    x = x0 = jax.nn.relu(x @ params["lin0_w"] + params["lin0_b"])
    for l, w in enumerate(params["conv_ws"], start=1):
        beta = math.log(theta / l + 1.0)
        h = (1.0 - alpha) * (adj @ x) + alpha * x0
        x = jax.nn.relu((1.0 - beta) * h + beta * (h @ w))
    z = x @ params["lin1_w"] + params["lin1_b"]
    return jax.nn.log_softmax(z, axis=-1)


# ---------------------------------------------------------------------------
# Main
# ---------------------------------------------------------------------------
if __name__ == "__main__":
    # Small synthetic "Cora-like" problem.
    N = 128          # nodes
    F = 64           # input feature dim (dataset.num_features)
    H = 32           # hidden_channels
    C = 8            # num_classes
    L = 2            # num_layers (GCN2Conv stack)
    ALPHA = 0.1
    THETA = 0.5

    key = jax.random.PRNGKey(0)
    kx, ka, k0w, k0b, k1w, k1b, kc = jax.random.split(key, 7)

    # Node features (row-normalized, mimicking T.NormalizeFeatures()).
    x = jax.random.uniform(kx, (N, F), dtype=jnp.float32)
    x = x / jnp.maximum(jnp.sum(x, axis=-1, keepdims=True), 1e-12)

    # Dense symmetric adjacency with self-loops, sym-normalized (pre-normalized
    # adjacency, since GCN2Conv uses normalize=False).
    a_rand = jax.random.uniform(ka, (N, N), dtype=jnp.float32)
    a_bin = (a_rand < 0.05).astype(jnp.float32)
    a_bin = jnp.maximum(a_bin, a_bin.T)
    a_bin = a_bin + jnp.eye(N, dtype=jnp.float32)
    deg = jnp.sum(a_bin, axis=-1)
    d_inv_sqrt = 1.0 / jnp.sqrt(deg)
    adj = a_bin * d_inv_sqrt[:, None] * d_inv_sqrt[None, :]

    # Deterministic parameter init (PyTorch-Linear-style uniform bounds; the
    # GCN2Conv shared weight uses a glorot-style uniform).
    def unif(k, shape, bound):
        return jax.random.uniform(k, shape, jnp.float32, -bound, bound)

    params = {
        "lin0_w": unif(k0w, (F, H), 1.0 / math.sqrt(F)),
        "lin0_b": unif(k0b, (H,), 1.0 / math.sqrt(F)),
        "lin1_w": unif(k1w, (H, C), 1.0 / math.sqrt(H)),
        "lin1_b": unif(k1b, (C,), 1.0 / math.sqrt(H)),
        "conv_ws": [
            unif(k, (H, H), math.sqrt(6.0 / (H + H)))
            for k in jax.random.split(kc, L)
        ],
    }

    out = net_forward(params, x, adj, alpha=ALPHA, theta=THETA)
    out = jax.block_until_ready(out)

    ref = jax.block_until_ready(
        net_forward_ref(params, x, adj, alpha=ALPHA, theta=THETA)
    )
    np.testing.assert_allclose(np.asarray(out), np.asarray(ref), rtol=1e-2, atol=1e-2)

    assert out.shape == (N, C) and out.dtype == jnp.float32
    print("KERNEL_OK")
</pallas_src>

<mosaic_0001>
module attributes {stable_mosaic.version = 11 : i64} {
  func.func @_gcn2_fused_kernel(%arg0: i32, %arg1: memref<128x64xf32, #tpu.memory_space<vmem>>, %arg2: memref<128x128xf32, #tpu.memory_space<vmem>>, %arg3: memref<64x128xf32, #tpu.memory_space<vmem>>, %arg4: memref<1x128xf32, #tpu.memory_space<vmem>>, %arg5: memref<2x128x128xf32, #tpu.memory_space<vmem>>, %arg6: memref<128x128xf32, #tpu.memory_space<vmem>>, %arg7: memref<1x128xf32, #tpu.memory_space<vmem>>, %arg8: memref<128x128xf32, #tpu.memory_space<vmem>>) attributes {dimension_semantics = [#tpu.dimension_semantics<arbitrary>], iteration_bounds = array<i64: 1>, scalar_prefetch = 0 : i64, scratch_operands = 0 : i64, tpu.core_type = #tpu.core_type<tc>, window_params = [{pipeline_mode = #tpu.pipeline_mode<synchronous>, transform_indices = @transform_0, window_bounds = array<i64: 128, 64>}, {pipeline_mode = #tpu.pipeline_mode<synchronous>, transform_indices = @transform_1, window_bounds = array<i64: 128, 128>}, {pipeline_mode = #tpu.pipeline_mode<synchronous>, transform_indices = @transform_2, window_bounds = array<i64: 64, 128>}, {pipeline_mode = #tpu.pipeline_mode<synchronous>, transform_indices = @transform_3, window_bounds = array<i64: 1, 128>}, {pipeline_mode = #tpu.pipeline_mode<synchronous>, transform_indices = @transform_4, window_bounds = array<i64: 2, 128, 128>}, {pipeline_mode = #tpu.pipeline_mode<synchronous>, transform_indices = @transform_5, window_bounds = array<i64: 128, 128>}, {pipeline_mode = #tpu.pipeline_mode<synchronous>, transform_indices = @transform_6, window_bounds = array<i64: 1, 128>}, {pipeline_mode = #tpu.pipeline_mode<synchronous>, transform_indices = @transform_7, window_bounds = array<i64: 128, 128>}]} {
    %c0 = arith.constant 0 : index
    %c0_0 = arith.constant 0 : index
    %0 = vector.load %arg1[%c0, %c0_0] : memref<128x64xf32, #tpu.memory_space<vmem>>, vector<128x64xf32>
    %c0_1 = arith.constant 0 : index
    %c0_2 = arith.constant 0 : index
    %1 = vector.load %arg3[%c0_1, %c0_2] : memref<64x128xf32, #tpu.memory_space<vmem>>, vector<64x128xf32>
    %cst = arith.constant dense<0.000000e+00> : vector<128x128xf32>
    %2 = tpu.matmul %0, %1, %cst {dimension_numbers = #tpu.dot_dimension_numbers<[1], [0], [0], [1], [0, 0, 1, 1], [], []>} : vector<128x64xf32>, vector<64x128xf32>, vector<128x128xf32> -> vector<128x128xf32>
    %c0_3 = arith.constant 0 : index
    %c0_4 = arith.constant 0 : index
    %3 = vector.load %arg4[%c0_3, %c0_4] : memref<1x128xf32, #tpu.memory_space<vmem>>, vector<1x128xf32>
    %4 = vector.broadcast %3 : vector<1x128xf32> to vector<128x128xf32>
    %5 = arith.addf %2, %4 : vector<128x128xf32>
    %cst_5 = arith.constant 0.000000e+00 : f32
    %6 = vector.broadcast %cst_5 : f32 to vector<128x128xf32>
    %7 = arith.maximumf %5, %6 : vector<128x128xf32>
    %cst_6 = arith.constant 1.000000e-01 : f32
    %8 = vector.broadcast %cst_6 : f32 to vector<128x128xf32>
    %9 = arith.mulf %8, %7 : vector<128x128xf32>
    %c0_7 = arith.constant 0 : index
    %c0_8 = arith.constant 0 : index
    %10 = vector.load %arg2[%c0_7, %c0_8] : memref<128x128xf32, #tpu.memory_space<vmem>>, vector<128x128xf32>
    %cst_9 = arith.constant dense<0.000000e+00> : vector<128x128xf32>
    %11 = tpu.matmul %10, %7, %cst_9 {dimension_numbers = #tpu.dot_dimension_numbers<[1], [0], [0], [1], [0, 0, 1, 1], [], []>} : vector<128x128xf32>, vector<128x128xf32>, vector<128x128xf32> -> vector<128x128xf32>
    %12 = arith.addf %11, %9 : vector<128x128xf32>
    %c0_10 = arith.constant 0 : index
    %c0_11 = arith.constant 0 : index
    %c0_12 = arith.constant 0 : index
    %13 = vector.load %arg5[%c0_10, %c0_11, %c0_12] : memref<2x128x128xf32, #tpu.memory_space<vmem>>, vector<1x128x128xf32>
    %14 = vector.shape_cast %13 : vector<1x128x128xf32> to vector<128x128xf32>
    %cst_13 = arith.constant dense<0.000000e+00> : vector<128x128xf32>
    %15 = tpu.matmul %12, %14, %cst_13 {dimension_numbers = #tpu.dot_dimension_numbers<[1], [0], [0], [1], [0, 0, 1, 1], [], []>} : vector<128x128xf32>, vector<128x128xf32>, vector<128x128xf32> -> vector<128x128xf32>
    %cst_14 = arith.constant 0.000000e+00 : f32
    %16 = vector.broadcast %cst_14 : f32 to vector<128x128xf32>
    %17 = arith.maximumf %15, %16 : vector<128x128xf32>
    %cst_15 = arith.constant dense<0.000000e+00> : vector<128x128xf32>
    %18 = tpu.matmul %10, %17, %cst_15 {dimension_numbers = #tpu.dot_dimension_numbers<[1], [0], [0], [1], [0, 0, 1, 1], [], []>} : vector<128x128xf32>, vector<128x128xf32>, vector<128x128xf32> -> vector<128x128xf32>
    %19 = arith.addf %18, %9 : vector<128x128xf32>
    %c1 = arith.constant 1 : index
    %c0_16 = arith.constant 0 : index
    %c0_17 = arith.constant 0 : index
    %20 = vector.load %arg5[%c1, %c0_16, %c0_17] : memref<2x128x128xf32, #tpu.memory_space<vmem>>, vector<1x128x128xf32>
    %21 = vector.shape_cast %20 : vector<1x128x128xf32> to vector<128x128xf32>
    %cst_18 = arith.constant dense<0.000000e+00> : vector<128x128xf32>
    %22 = tpu.matmul %19, %21, %cst_18 {dimension_numbers = #tpu.dot_dimension_numbers<[1], [0], [0], [1], [0, 0, 1, 1], [], []>} : vector<128x128xf32>, vector<128x128xf32>, vector<128x128xf32> -> vector<128x128xf32>
    %cst_19 = arith.constant 0.000000e+00 : f32
    %23 = vector.broadcast %cst_19 : f32 to vector<128x128xf32>
    %24 = arith.maximumf %22, %23 : vector<128x128xf32>
    %c0_20 = arith.constant 0 : index
    %c0_21 = arith.constant 0 : index
    %25 = vector.load %arg6[%c0_20, %c0_21] : memref<128x128xf32, #tpu.memory_space<vmem>>, vector<128x128xf32>
    %cst_22 = arith.constant dense<0.000000e+00> : vector<128x128xf32>
    %26 = tpu.matmul %24, %25, %cst_22 {dimension_numbers = #tpu.dot_dimension_numbers<[1], [0], [0], [1], [0, 0, 1, 1], [], []>} : vector<128x128xf32>, vector<128x128xf32>, vector<128x128xf32> -> vector<128x128xf32>
    %c0_23 = arith.constant 0 : index
    %c0_24 = arith.constant 0 : index
    %27 = vector.load %arg7[%c0_23, %c0_24] : memref<1x128xf32, #tpu.memory_space<vmem>>, vector<1x128xf32>
    %28 = vector.broadcast %27 : vector<1x128xf32> to vector<128x128xf32>
    %29 = arith.addf %26, %28 : vector<128x128xf32>
    %30 = tpu.iota {dimensions = array<i32: 1>} : vector<128x128xi32>
    %c8_i32 = arith.constant 8 : i32
    %31 = vector.broadcast %c8_i32 : i32 to vector<128x128xi32>
    %32 = arith.cmpi slt, %30, %31 : vector<128x128xi32>
    %cst_25 = arith.constant -1.000000e+30 : f32
    %33 = vector.broadcast %cst_25 : f32 to vector<128x128xf32>
    %34 = arith.select %32, %29, %33 : vector<128x128xi1>, vector<128x128xf32>
    %cst_26 = arith.constant dense<0xFF800000> : vector<128xf32>
    %35 = vector.multi_reduction <maximumf>, %34, %cst_26 [1] : vector<128x128xf32> to vector<128xf32>
    %36 = vector.shape_cast %35 : vector<128xf32> to vector<128x1xf32>
    %37 = vector.broadcast %36 : vector<128x1xf32> to vector<128x128xf32>
    %38 = arith.subf %34, %37 : vector<128x128xf32>
    %39 = math.exp %38 : vector<128x128xf32>
    %cst_27 = arith.constant dense<0.000000e+00> : vector<128xf32>
    %40 = vector.multi_reduction <add>, %39, %cst_27 [1] : vector<128x128xf32> to vector<128xf32>
    %41 = vector.shape_cast %40 : vector<128xf32> to vector<128x1xf32>
    %42 = math.log %41 : vector<128x1xf32>
    %43 = arith.addf %42, %36 : vector<128x1xf32>
    %44 = vector.broadcast %43 : vector<128x1xf32> to vector<128x128xf32>
    %45 = arith.subf %34, %44 : vector<128x128xf32>
    %c0_28 = arith.constant 0 : index
    %c0_29 = arith.constant 0 : index
    %46 = vector.load %arg8[%c0_28, %c0_29] : memref<128x128xf32, #tpu.memory_space<vmem>>, vector<128x128xf32>
    tpu.vector_store %arg8[%c0_28, %c0_29], %45 {strides = array<i32>} : memref<128x128xf32, #tpu.memory_space<vmem>>, vector<128x128xf32>,
    return
  }
  func.func @transform_0(%arg0: i32) -> (i32, i32) {
    %c0_i32 = arith.constant 0 : i32
    %c0_i32_0 = arith.constant 0 : i32
    %c0_i32_1 = arith.constant 0 : i32
    return %c0_i32, %c0_i32_0 : i32, i32
  }
  func.func @transform_1(%arg0: i32) -> (i32, i32) {
    %c0_i32 = arith.constant 0 : i32
    %c0_i32_0 = arith.constant 0 : i32
    %c0_i32_1 = arith.constant 0 : i32
    return %c0_i32, %c0_i32_0 : i32, i32
  }
  func.func @transform_2(%arg0: i32) -> (i32, i32) {
    %c0_i32 = arith.constant 0 : i32
    %c0_i32_0 = arith.constant 0 : i32
    %c0_i32_1 = arith.constant 0 : i32
    return %c0_i32, %c0_i32_0 : i32, i32
  }
  func.func @transform_3(%arg0: i32) -> (i32, i32) {
    %c0_i32 = arith.constant 0 : i32
    %c0_i32_0 = arith.constant 0 : i32
    %c0_i32_1 = arith.constant 0 : i32
    return %c0_i32, %c0_i32_0 : i32, i32
  }
  func.func @transform_4(%arg0: i32) -> (i32, i32, i32) {
    %c0_i32 = arith.constant 0 : i32
    %c0_i32_0 = arith.constant 0 : i32
    %c0_i32_1 = arith.constant 0 : i32
    %c0_i32_2 = arith.constant 0 : i32
    return %c0_i32, %c0_i32_0, %c0_i32_1 : i32, i32, i32
  }
  func.func @transform_5(%arg0: i32) -> (i32, i32) {
    %c0_i32 = arith.constant 0 : i32
    %c0_i32_0 = arith.constant 0 : i32
    %c0_i32_1 = arith.constant 0 : i32
    return %c0_i32, %c0_i32_0 : i32, i32
  }
  func.func @transform_6(%arg0: i32) -> (i32, i32) {
    %c0_i32 = arith.constant 0 : i32
    %c0_i32_0 = arith.constant 0 : i32
    %c0_i32_1 = arith.constant 0 : i32
    return %c0_i32, %c0_i32_0 : i32, i32
  }
  func.func @transform_7(%arg0: i32) -> (i32, i32) {
    %c0_i32 = arith.constant 0 : i32
    %c0_i32_0 = arith.constant 0 : i32
    %c0_i32_1 = arith.constant 0 : i32
    return %c0_i32, %c0_i32_0 : i32, i32
  }
}

</mosaic_0001>

<bundles_post_ra>
// kernel: tpu_custom_call.1
= control target key start
LH: loop header
LB: loop body
LE: loop exit
PB: predicated region body
PF: predicated region fallthrough
CT: control target
= control target key end

     0   :  { %12 = vsyncpa [#allocation3], 0  ;;  %s2894_s0 = inlined_call_operand.vmem [shape: f32[128,64], index: 0, kind: input, shape index: {}]   ;;  %s2895_s1 = inlined_call_operand.vmem [shape: f32[128,128], index: 1, kind: input, shape index: {}]   ;;  %s2896_s2 = inlined_call_operand.vmem [shape: f32[64,128], index: 2, kind: input, shape index: {}]   ;;  %s2897_s3 = inlined_call_operand.vmem [shape: f32[1,128], index: 3, kind: input, shape index: {}]   ;;  %s2898_s4 = inlined_call_operand.hbm [shape: f32[2,128,128], index: 4, kind: input, shape index: {}]   ;;  %s2899_s5 = inlined_call_operand.hbm [shape: f32[128,128], index: 5, kind: input, shape index: {}]   ;;  %s2900_s6 = inlined_call_operand.vmem [shape: f32[1,128], index: 6, kind: input, shape index: {}]   ;;  %s2901_s7 = inlined_call_operand.hbm [shape: f32[128,128], index: 7, kind: output, shape index: {}]  }
   0x1   :  { %13 = vsyncpa [#allocation6], 0 }
   0x2   :  { %14 = vsyncpa [#allocation4], 0  ;;  %s2225_s24 = smov [#allocation2]   ;;  %s2153_s28 = scalar_lea.hbm %s2898_s4, 4096 }
   0x3   :  { %s28_s25 = sshll.u32 %s2225_s24, 4  ;;  %p2154_p0 = scmp.ne.s32.totalorder %s2898_s4, %s2153_s28  ;;  %s29_s25 = int_to_ptr.vmem [resolvable:$true] %s28_s25 }
   0x4   :  { %p2157_p1 = scmp.lt.u32.totalorder %s2153_s28, %s2898_s4 }
   0x6   :  { %p2159_p2 = pnand %p2157_p1, %p2154_p0 }
   0x8   :  { %2162 = shalt.err (!%p2159_p2)
}
   0x9   :  { %s2163_s10 = scalar_lea.vmem %s29_s25, 4096  ;;  %p2168_p4 = scmp.lt.s32.totalorder %s29_s25, %s29_s25 }
   0xa   :  { %p2164_p3 = scmp.ne.s32.totalorder %s29_s25, %s2163_s10  ;;  %p2169_p5 = scmp.lt.s32.totalorder %s2163_s10, %s2163_s10 }
   0xc   :  { %p2170_p6 = por %p2169_p5, %p2168_p4 }
   0xe   :  { %p2171_p7 = pnand %p2170_p6, %p2164_p3 }
  0x10   :  { %2174 = shalt.err (!%p2171_p7)
}
  0x11   :  { %s2226_s11 = smov 128   ;;  %s2227_s12 = smov 8  }
  0x12   :  { %34 = dma.hbm_to_vmem [thread:$0]  %s2898_s4, 4096, %s29_s25, [#allocation3], %s2226_s11, %s2226_s11, %s2227_s12  }
  0x13   :  { %s2228_s15 = smov [#allocation5]   ;;  %s2175_s19 = scalar_lea.hbm %s2899_s5, 2048 }
  0x14   :  { %s40_s16 = sshll.u32 %s2228_s15, 4  ;;  %p2176_p8 = scmp.ne.s32.totalorder %s2899_s5, %s2175_s19  ;;  %s41_s16 = int_to_ptr.vmem [resolvable:$true] %s40_s16 }
  0x15   :  { %p2179_p9 = scmp.lt.u32.totalorder %s2175_s19, %s2899_s5 }
  0x17   :  { %p2181_p10 = pnand %p2179_p9, %p2176_p8 }
  0x19   :  { %2184 = shalt.err (!%p2181_p10)
}
  0x1a   :  { %s2185_s24 = scalar_lea.vmem %s41_s16, 2048  ;;  %p2190_p12 = scmp.lt.s32.totalorder %s41_s16, %s41_s16 }
  0x1b   :  { %p2186_p11 = scmp.ne.s32.totalorder %s41_s16, %s2185_s24  ;;  %p2191_p13 = scmp.lt.s32.totalorder %s2185_s24, %s2185_s24 }
  0x1d   :  { %p2192_p0 = por %p2191_p13, %p2190_p12 }
  0x1f   :  { %p2193_p1 = pnand %p2192_p0, %p2186_p11 }
  0x21   :  { %2196 = shalt.err (!%p2193_p1)
}
  0x22   :  { %46 = dma.hbm_to_vmem [thread:$0]  %s2899_s5, 2048, %s41_s16, [#allocation6], %s2226_s11, %s2226_s11, %s2227_s12  }
  0x23   :  { %2219 = dma.done.wait [#allocation3], 4096  }
  0x24   :  { %2220 = vsyncadd [#allocation3], 4294963200 }
  0x25   :  { %2221 = dma.done.wait [#allocation6], 2048  }
  0x26   :  { %2222 = vsyncadd [#allocation6], 4294965248  ;;  %v71_v0 = vld [vmem:[%s2896_s2] sm:$0xff]  ;;  %v72_v1 = vld [vmem:[%s2896_s2 + $0x8] sm:$0xff]  ;;  %vm86_vm0 = vcmask 523264  }
  0x27   :  { %v73_v2 = vld [vmem:[%s2896_s2 + $0x10] sm:$0xff]  ;;  %v1892_v3 = vpack.c.bf16 %v72_v1, %v71_v0  ;;  %v74_v4 = vld [vmem:[%s2896_s2 + $0x18] sm:$0xff]  ;;  %v75_v6 = vld [vmem:[%s2896_s2 + $0x20] sm:$0xff] }
  0x28   :  { %v1896_v5 = vpack.c.bf16 %v74_v4, %v73_v2  ;;  %v76_v7 = vld [vmem:[%s2896_s2 + $0x28] sm:$0xff]  ;;  %v55_v8 = vld [vmem:[%s2894_s0] sm:$0xff]  ;;  %v77_v10 = vld [vmem:[%s2896_s2 + $0x30] sm:$0xff] }
  0x29   :  { %1893 = vmatprep.subr.bf16.mxu0 %v1892_v3  ;;  %1588 = vmatprep.mubr.msk.f32.mxu0 %vm86_vm0, %v55_v8  ;;  %v1900_v9 = vpack.c.bf16 %v76_v7, %v75_v6  ;;  %v78_v11 = vld [vmem:[%s2896_s2 + $0x38] sm:$0xff]  ;;  %v56_v13 = vld [vmem:[%s2894_s0 + $0x8] sm:$0xff]  ;;  %v57_v14 = vld [vmem:[%s2894_s0 + $0x10] sm:$0xff] }
  0x2a   :  { %1895 = vmatpush3.bf16.msra.mxu0 %v1892_v3  ;;  %v1904_v12 = vpack.c.bf16 %v78_v11, %v77_v10  ;;  %v58_v15 = vld [vmem:[%s2894_s0 + $0x18] sm:$0xff]  ;;  %v59_v16 = vld [vmem:[%s2894_s0 + $0x20] sm:$0xff]  ;;  %v60_v17 = vld [vmem:[%s2894_s0 + $0x28] sm:$0xff] }
  0x2b   :  { %1897 = vmatprep.subr.bf16.mxu0 %v1896_v5  ;;  %v61_v18 = vld [vmem:[%s2894_s0 + $0x30] sm:$0xff]  ;;  %v62_v19 = vld [vmem:[%s2894_s0 + $0x38] sm:$0xff]  ;;  %v63_v20 = vld [vmem:[%s2894_s0 + $0x40] sm:$0xff] }
  0x2c   :  { %v64_v21 = vld [vmem:[%s2894_s0 + $0x48] sm:$0xff]  ;;  %v65_v22 = vld [vmem:[%s2894_s0 + $0x50] sm:$0xff]  ;;  %v66_v23 = vld [vmem:[%s2894_s0 + $0x58] sm:$0xff] }
  0x2d   :  { %v67_v24 = vld [vmem:[%s2894_s0 + $0x60] sm:$0xff]  ;;  %v68_v25 = vld [vmem:[%s2894_s0 + $0x68] sm:$0xff]  ;;  %v69_v26 = vld [vmem:[%s2894_s0 + $0x70] sm:$0xff] }
  0x2e   :  { %1899 = vmatpush3.bf16.msra.mxu0 %v1896_v5  ;;  %v70_v27 = vld [vmem:[%s2894_s0 + $0x78] sm:$0xff]  ;;  %v2391_v28 = vld [vmem:[%s2895_s1] sm:$0xff]  ;;  %v474_v30 = vld [vmem:[#allocation2 + $0x8] sm:$0xff] }
  0x2f   :  { %1901 = vmatprep.subr.bf16.mxu0 %v1900_v9  ;;  %1644 = vmatprep.mubr.f32.mxu1 %v2391_v28  ;;  %v473_v29 = vld [vmem:[#allocation2] sm:$0xff]  ;;  %v475_v31 = vld [vmem:[#allocation2 + $0x10] sm:$0xff]  ;;  %v476_v33 = vld [vmem:[#allocation2 + $0x18] sm:$0xff] }
  0x30   :  { %v1940_v32 = vpack.c.bf16 %v474_v30, %v473_v29  ;;  %v1944_v34 = vpack.c.bf16 %v476_v33, %v475_v31  ;;  %v477_v35 = vld [vmem:[#allocation2 + $0x20] sm:$0xff]  ;;  %v478_v36 = vld [vmem:[#allocation2 + $0x28] sm:$0xff]  ;;  %v479_v38 = vld [vmem:[#allocation2 + $0x30] sm:$0xff] }
  0x31   :  { %v1948_v37 = vpack.c.bf16 %v478_v36, %v477_v35  ;;  %v480_v39 = vld [vmem:[#allocation2 + $0x38] sm:$0xff]  ;;  %v481_v41 = vld [vmem:[#allocation2 + $0x40] sm:$0xff]  ;;  %v482_v42 = vld [vmem:[#allocation2 + $0x48] sm:$0xff] }
  0x32   :  { %1903 = vmatpush3.bf16.msra.mxu0 %v1900_v9  ;;  %v1952_v40 = vpack.c.bf16 %v480_v39, %v479_v38  ;;  %v1956_v43 = vpack.c.bf16 %v482_v42, %v481_v41  ;;  %v483_v44 = vld [vmem:[#allocation2 + $0x50] sm:$0xff]  ;;  %v484_v45 = vld [vmem:[#allocation2 + $0x58] sm:$0xff]  ;;  %v485_v47 = vld [vmem:[#allocation2 + $0x60] sm:$0xff] }
  0x33   :  { %1905 = vmatprep.subr.bf16.mxu0 %v1904_v12  ;;  %v1960_v46 = vpack.c.bf16 %v484_v45, %v483_v44  ;;  %v486_v48 = vld [vmem:[#allocation2 + $0x68] sm:$0xff]  ;;  %v2397_v50 = vld [vmem:[%s2897_s3] ss:$0 sm:$0xff]  ;;  %v2503_v45 = vld [vmem:[%s2895_s1 + $0x10] sm:$0xff] }
  0x34   :  { %v1964_v49 = vpack.c.bf16 %v486_v48, %v485_v47  ;;  %v2498_v44 = vld [vmem:[%s2895_s1 + $0x8] sm:$0xff]  ;;  %v2515_v47 = vld [vmem:[%s2895_s1 + $0x20] sm:$0xff] }
  0x35   :  { %v2522_v48 = vld [vmem:[%s2895_s1 + $0x28] sm:$0xff] }
  0x36   :  { %1907 = vmatpush3.bf16.msra.mxu0 %v1904_v12 }
  0x37   :  { %1941 = vmatprep.subr.bf16.mxu0 %v1940_v32 }
  0x39   :  { %1589 = vmatmul.mubr.msk.f32.vlgmr.msra.gmra.mrb[0].mxu0 %vm86_vm0, %v56_v13 }
  0x3a   :  { %1591 = vmatprep.mubr.msk.f32.mxu0 %vm86_vm0, %v57_v14  ;;  %1943 = vmatpush3.bf16.msra.mxu0 %v1940_v32 }
  0x3b   :  { %1945 = vmatprep.subr.bf16.mxu0 %v1944_v34 }
  0x3d   :  { %1592 = vmatmul.mubr.msk.f32.gmra.mrb[2].mxu0 %vm86_vm0, %v58_v15 }
  0x3e   :  { %1594 = vmatprep.mubr.msk.f32.mxu0 %vm86_vm0, %v59_v16  ;;  %1947 = vmatpush3.bf16.msra.mxu0 %v1944_v34 }
  0x3f   :  { %1949 = vmatprep.subr.bf16.mxu0 %v1948_v37 }
  0x41   :  { %1595 = vmatmul.mubr.msk.f32.gmra.mrb[4].mxu0 %vm86_vm0, %v60_v17 }
  0x42   :  { %1597 = vmatprep.mubr.msk.f32.mxu0 %vm86_vm0, %v61_v18  ;;  %1951 = vmatpush3.bf16.msra.mxu0 %v1948_v37 }
  0x43   :  { %1953 = vmatprep.subr.bf16.mxu0 %v1952_v40 }
  0x45   :  { %1598 = vmatmul.mubr.msk.f32.gmra.mrb[6].mxu0 %vm86_vm0, %v62_v19 }
  0x46   :  { %1600 = vmatprep.mubr.msk.f32.mxu0 %vm86_vm0, %v63_v20  ;;  %1955 = vmatpush3.bf16.msra.mxu0 %v1952_v40 }
  0x47   :  { %1957 = vmatprep.subr.bf16.mxu0 %v1956_v43 }
  0x49   :  { %1601 = vmatmul.mubr.msk.f32.gmra.mrb[8].mxu0 %vm86_vm0, %v64_v21 }
  0x4a   :  { %1603 = vmatprep.mubr.msk.f32.mxu0 %vm86_vm0, %v65_v22  ;;  %1959 = vmatpush3.bf16.msra.mxu0 %v1956_v43 }
  0x4b   :  { %1961 = vmatprep.subr.bf16.mxu0 %v1960_v46 }
  0x4d   :  { %1604 = vmatmul.mubr.msk.f32.gmra.mrb[10].mxu0 %vm86_vm0, %v66_v23 }
  0x4e   :  { %1606 = vmatprep.mubr.msk.f32.mxu0 %vm86_vm0, %v67_v24  ;;  %1963 = vmatpush3.bf16.msra.mxu0 %v1960_v46  ;;  %v2510_v46 = vld [vmem:[%s2895_s1 + $0x18] sm:$0xff] }
  0x4f   :  { %1965 = vmatprep.subr.bf16.mxu0 %v1964_v49 }
  0x51   :  { %1607 = vmatmul.mubr.msk.f32.gmra.mrb[12].mxu0 %vm86_vm0, %v68_v25 }
  0x52   :  { %1609 = vmatprep.mubr.msk.f32.mxu0 %vm86_vm0, %v69_v26  ;;  %1967 = vmatpush3.bf16.msra.mxu0 %v1964_v49  ;;  %v2527_v49 = vld [vmem:[%s2895_s1 + $0x30] sm:$0xff] }
  0x55   :  { %1610 = vmatmul.mubr.msk.f32.gmra.mrb[14].mxu0 %vm86_vm0, %v70_v27 }
 0x10c   :  { %v1590_v51 = vpop.f32.mrb[0].mxu0 }
 0x10d   :  { %v2400_v52 = vadd.f32 %v1590_v51, %v2397_v50  ;;  %v201_v53 = vpop.f32.mrb[1].mxu0  ;;  %v2539_v51 = vld [vmem:[%s2895_s1 + $0x40] sm:$0xff] }
 0x10e   :  { %v2403_v54 = vadd.f32 %v2397_v50, %v201_v53  ;;  %v2546_v53 = vld [vmem:[%s2895_s1 + $0x48] sm:$0xff] }
 0x10f   :  { %v281_v55 = vmax.f32 %v2400_v52, 0.0 }
 0x110   :  { %v280_v56 = vmax.f32 %v2403_v54, 0.0  ;;  %v1593_v57 = vpop.f32.mrb[2].mxu0 }
 0x111   :  { %v2408_v58 = vadd.f32 %v1593_v57, %v2397_v50  ;;  %v211_v59 = vpop.f32.mrb[3].mxu0  ;;  %v2551_v57 = vld [vmem:[%s2895_s1 + $0x50] sm:$0xff] }
 0x112   :  { %v2411_v60 = vadd.f32 %v2397_v50, %v211_v59  ;;  %v1908_v61 = vpack.c.bf16 %v281_v55, %v280_v56  ;;  %v2558_v59 = vld [vmem:[%s2895_s1 + $0x58] sm:$0xff] }
 0x113   :  { %v283_v62 = vmax.f32 %v2408_v58, 0.0 }
 0x114   :  { %v282_v63 = vmax.f32 %v2411_v60, 0.0  ;;  %v1596_v0 = vpop.f32.mrb[4].mxu0  ;;  %1909 = vmatprep.subr.bf16.mxu1 %v1908_v61 }
 0x115   :  { %v2420_v1 = vadd.f32 %v1596_v0, %v2397_v50  ;;  %v221_v2 = vpop.f32.mrb[5].mxu0  ;;  %1911 = vmatpush3.bf16.msra.mxu1 %v1908_v61  ;;  %v2563_v61 = vld [vmem:[%s2895_s1 + $0x60] sm:$0xff]  ;;  %v2570_v0 = vld [vmem:[%s2895_s1 + $0x68] sm:$0xff]  ;;  %v2602_v54 = vmul.f32 0.1, %v283_v62 }
 0x116   :  { %v1912_v3 = vpack.c.bf16 %v283_v62, %v282_v63  ;;  %v2427_v4 = vadd.f32 %v2397_v50, %v221_v2  ;;  %v2575_v2 = vld [vmem:[%s2895_s1 + $0x70] sm:$0xff] }
 0x117   :  { %v285_v5 = vmax.f32 %v2420_v1, 0.0 }
 0x118   :  { %v284_v6 = vmax.f32 %v2427_v4, 0.0  ;;  %v1599_v7 = vpop.f32.mrb[6].mxu0  ;;  %1913 = vmatprep.subr.bf16.mxu1 %v1912_v3 }
 0x119   :  { %v2432_v8 = vadd.f32 %v1599_v7, %v2397_v50  ;;  %v231_v9 = vpop.f32.mrb[7].mxu0  ;;  %1915 = vmatpush3.bf16.msra.mxu1 %v1912_v3  ;;  %v2582_v3 = vld [vmem:[%s2895_s1 + $0x78] sm:$0xff]  ;;  %v487_v7 = vld [vmem:[#allocation2 + $0x70] sm:$0xff]  ;;  %v2612_v60 = vmul.f32 0.1, %v285_v5 }
 0x11a   :  { %v1916_v10 = vpack.c.bf16 %v285_v5, %v284_v6  ;;  %v2439_v11 = vadd.f32 %v2397_v50, %v231_v9  ;;  %v488_v9 = vld [vmem:[#allocation2 + $0x78] sm:$0xff] }
 0x11b   :  { %v287_v12 = vmax.f32 %v2432_v8, 0.0 }
 0x11c   :  { %v286_v13 = vmax.f32 %v2439_v11, 0.0  ;;  %v1602_v14 = vpop.f32.mrb[8].mxu0  ;;  %1917 = vmatprep.subr.bf16.mxu1 %v1916_v10 }
 0x11d   :  { %v2444_v15 = vadd.f32 %v1602_v14, %v2397_v50  ;;  %v241_v16 = vpop.f32.mrb[9].mxu0  ;;  %1919 = vmatpush3.bf16.msra.mxu1 %v1916_v10  ;;  %v1968_v10 = vpack.c.bf16 %v488_v9, %v487_v7  ;;  %v2622_v4 = vmul.f32 0.1, %v287_v12 }
 0x11e   :  { %v1920_v17 = vpack.c.bf16 %v287_v12, %v286_v13  ;;  %v2451_v18 = vadd.f32 %v2397_v50, %v241_v16  ;;  %v2588_v16 = vmul.f32 0.1, %v280_v56 }
 0x11f   :  { %v289_v19 = vmax.f32 %v2444_v15, 0.0  ;;  %1969 = vmatprep.subr.bf16.mxu0 %v1968_v10 }
 0x120   :  { %v288_v20 = vmax.f32 %v2451_v18, 0.0  ;;  %v1605_v21 = vpop.f32.mrb[10].mxu0  ;;  %1921 = vmatprep.subr.bf16.mxu1 %v1920_v17  ;;  %1971 = vmatpush3.bf16.msra.mxu0 %v1968_v10 }
 0x121   :  { %v2456_v22 = vadd.f32 %v1605_v21, %v2397_v50  ;;  %v251_v23 = vpop.f32.mrb[11].mxu0  ;;  %1923 = vmatpush3.bf16.msra.mxu1 %v1920_v17  ;;  %v2592_v17 = vmul.f32 0.1, %v281_v55  ;;  %v2632_v11 = vmul.f32 0.1, %v289_v19 }
 0x122   :  { %v1924_v24 = vpack.c.bf16 %v289_v19, %v288_v20  ;;  %v2463_v25 = vadd.f32 %v2397_v50, %v251_v23 }
 0x123   :  { %v291_v26 = vmax.f32 %v2456_v22, 0.0 }
 0x124   :  { %v290_v27 = vmax.f32 %v2463_v25, 0.0  ;;  %v1608_v29 = vpop.f32.mrb[12].mxu0  ;;  %1925 = vmatprep.subr.bf16.mxu1 %v1924_v24 }
 0x125   :  { %v2468_v30 = vadd.f32 %v1608_v29, %v2397_v50  ;;  %v261_v31 = vpop.f32.mrb[13].mxu0  ;;  %1927 = vmatpush3.bf16.msra.mxu1 %v1924_v24  ;;  %v2598_v29 = vmul.f32 0.1, %v282_v63  ;;  %v2642_v18 = vmul.f32 0.1, %v291_v26 }
 0x126   :  { %v1928_v32 = vpack.c.bf16 %v291_v26, %v290_v27  ;;  %v2475_v33 = vadd.f32 %v2397_v50, %v261_v31  ;;  %v2638_v9 = vmul.f32 0.1, %v290_v27 }
 0x127   :  { %v293_v34 = vmax.f32 %v2468_v30, 0.0 }
 0x128   :  { %v292_v35 = vmax.f32 %v2475_v33, 0.0  ;;  %v1611_v36 = vpop.f32.mrb[14].mxu0  ;;  %1929 = vmatprep.subr.bf16.mxu1 %v1928_v32 }
 0x129   :  { %v2480_v37 = vadd.f32 %v1611_v36, %v2397_v50  ;;  %v271_v38 = vpop.f32.mrb[15].mxu0  ;;  %1931 = vmatpush3.bf16.msra.mxu1 %v1928_v32  ;;  %v2608_v32 = vmul.f32 0.1, %v284_v6  ;;  %v2652_v25 = vmul.f32 0.1, %v293_v34 }
 0x12a   :  { %v1932_v39 = vpack.c.bf16 %v293_v34, %v292_v35  ;;  %v2487_v40 = vadd.f32 %v2397_v50, %v271_v38  ;;  %v2534_v50 = vld [vmem:[%s2895_s1 + $0x38] sm:$0xff]  ;;  %v2618_v38 = vmul.f32 0.1, %v286_v13 }
 0x12b   :  { %v295_v41 = vmax.f32 %v2480_v37, 0.0 }
 0x12c   :  { %v294_v42 = vmax.f32 %v2487_v40, 0.0  ;;  %1933 = vmatprep.subr.bf16.mxu1 %v1932_v39 }
 0x12d   :  { %1935 = vmatpush3.bf16.msra.mxu1 %v1932_v39  ;;  %v2662_v33 = vmul.f32 0.1, %v295_v41 }
 0x12e   :  { %v1936_v43 = vpack.c.bf16 %v295_v41, %v294_v42  ;;  %v802_v41 = vld [vmem:[#allocation2 + $0xb0] sm:$0xff] }
 0x130   :  { %1937 = vmatprep.subr.bf16.mxu1 %v1936_v43 }
 0x131   :  { %1939 = vmatpush3.bf16.msra.mxu1 %v1936_v43  ;;  %v2628_v43 = vmul.f32 0.1, %v288_v20 }
 0x134   :  { %1645 = vmatmul.mubr.f32.vlgmr.msra.gmra.mrb[0].mxu1 %v2498_v44 }
 0x135   :  { %1647 = vmatprep.mubr.f32.mxu1 %v2503_v45 }
 0x138   :  { %1648 = vmatmul.mubr.f32.gmra.mrb[2].mxu1 %v2510_v46 }
 0x139   :  { %1650 = vmatprep.mubr.f32.mxu1 %v2515_v47 }
 0x13c   :  { %1651 = vmatmul.mubr.f32.gmra.mrb[4].mxu1 %v2522_v48 }
 0x13d   :  { %1653 = vmatprep.mubr.f32.mxu1 %v2527_v49 }
 0x140   :  { %1654 = vmatmul.mubr.f32.gmra.mrb[6].mxu1 %v2534_v50 }
 0x141   :  { %1656 = vmatprep.mubr.f32.mxu1 %v2539_v51 }
 0x144   :  { %1657 = vmatmul.mubr.f32.gmra.mrb[8].mxu1 %v2546_v53 }
 0x145   :  { %1659 = vmatprep.mubr.f32.mxu1 %v2551_v57 }
 0x148   :  { %1660 = vmatmul.mubr.f32.gmra.mrb[10].mxu1 %v2558_v59 }
 0x149   :  { %1662 = vmatprep.mubr.f32.mxu1 %v2563_v61 }
 0x14c   :  { %1663 = vmatmul.mubr.f32.gmra.mrb[12].mxu1 %v2570_v0 }
 0x14d   :  { %1665 = vmatprep.mubr.f32.mxu1 %v2575_v2 }
 0x150   :  { %1666 = vmatmul.mubr.f32.gmra.mrb[14].mxu1 %v2582_v3 }
 0x151   :  { %1756 = vmatprep.mubr.f32.mxu1 %v2391_v28 }
 0x207   :  { %v1646_v14 = vpop.f32.mrb[0].mxu1 }
 0x208   :  { %v394_v21 = vpop.f32.mrb[1].mxu1  ;;  %v400_v24 = vadd.f32 %v1646_v14, %v2592_v17  ;;  %v2648_v14 = vmul.f32 0.1, %v292_v35 }
 0x209   :  { %v395_v23 = vadd.f32 %v394_v21, %v2588_v16 }
 0x20b   :  { %v1649_v28 = vpop.f32.mrb[2].mxu1  ;;  %1700 = vmatprep.mubr.f32.mxu0 %v395_v23  ;;  %v2658_v23 = vmul.f32 0.1, %v294_v42  ;;  %v800_v42 = vld [vmem:[#allocation2 + $0xa0] sm:$0xff] }
 0x20c   :  { %v404_v56 = vpop.f32.mrb[3].mxu1  ;;  %1701 = vmatmul.mubr.f32.vlgmr.msra.gmra.mrb[16].mxu0 %v400_v24  ;;  %v410_v55 = vadd.f32 %v1649_v28, %v2602_v54  ;;  %v796_v24 = vld [vmem:[#allocation2 + $0x80] sm:$0xff]  ;;  %v797_v28 = vld [vmem:[#allocation2 + $0x88] sm:$0xff] }
 0x20d   :  { %v405_v52 = vadd.f32 %v404_v56, %v2598_v29  ;;  %v798_v56 = vld [vmem:[#allocation2 + $0x90] sm:$0xff] }
 0x20f   :  { %v1652_v31 = vpop.f32.mrb[4].mxu1  ;;  %1703 = vmatprep.mubr.f32.mxu0 %v405_v52  ;;  %v2004_v52 = vpack.c.bf16 %v797_v28, %v796_v24 }
 0x210   :  { %v414_v63 = vpop.f32.mrb[5].mxu1  ;;  %1704 = vmatmul.mubr.f32.gmra.mrb[18].mxu0 %v410_v55  ;;  %v420_v62 = vadd.f32 %v1652_v31, %v2612_v60  ;;  %v799_v55 = vld [vmem:[#allocation2 + $0x98] sm:$0xff]  ;;  %v801_v31 = vld [vmem:[#allocation2 + $0xa8] sm:$0xff] }
 0x211   :  { %v415_v58 = vadd.f32 %v414_v63, %v2608_v32  ;;  %v2008_v40 = vpack.c.bf16 %v799_v55, %v798_v56  ;;  %2005 = vmatprep.subr.bf16.mxu0 %v2004_v52  ;;  %v2012_v37 = vpack.c.bf16 %v801_v31, %v800_v42  ;;  %v803_v63 = vld [vmem:[#allocation2 + $0xb8] sm:$0xff] }
 0x212   :  { %2007 = vmatpush3.bf16.msra.mxu0 %v2004_v52 }
 0x213   :  { %v1655_v36 = vpop.f32.mrb[6].mxu1  ;;  %1706 = vmatprep.mubr.f32.mxu0 %v415_v58  ;;  %2009 = vmatprep.subr.bf16.mxu0 %v2008_v40  ;;  %v2016_v58 = vpack.c.bf16 %v803_v63, %v802_v41 }
 0x214   :  { %v424_v6 = vpop.f32.mrb[7].mxu1  ;;  %1707 = vmatmul.mubr.f32.gmra.mrb[20].mxu0 %v420_v62  ;;  %v430_v5 = vadd.f32 %v1655_v36, %v2622_v4  ;;  %v804_v62 = vld [vmem:[#allocation2 + $0xc0] sm:$0xff]  ;;  %v805_v36 = vld [vmem:[#allocation2 + $0xc8] sm:$0xff] }
 0x215   :  { %v425_v1 = vadd.f32 %v424_v6, %v2618_v38  ;;  %v2020_v6 = vpack.c.bf16 %v805_v36, %v804_v62 }
 0x216   :  { %2011 = vmatpush3.bf16.msra.mxu0 %v2008_v40 }
 0x217   :  { %v1658_v39 = vpop.f32.mrb[8].mxu1  ;;  %1709 = vmatprep.mubr.f32.mxu0 %v425_v1  ;;  %2013 = vmatprep.subr.bf16.mxu0 %v2012_v37  ;;  %v806_v1 = vld [vmem:[#allocation2 + $0xd0] sm:$0xff] }
 0x218   :  { %v434_v13 = vpop.f32.mrb[9].mxu1  ;;  %1710 = vmatmul.mubr.f32.gmra.mrb[22].mxu0 %v430_v5  ;;  %v440_v12 = vadd.f32 %v1658_v39, %v2632_v11  ;;  %v807_v5 = vld [vmem:[#allocation2 + $0xd8] sm:$0xff] }
 0x219   :  { %v435_v8 = vadd.f32 %v434_v13, %v2628_v43  ;;  %v2024_v39 = vpack.c.bf16 %v807_v5, %v806_v1  ;;  %v808_v13 = vld [vmem:[#allocation2 + $0xe0] sm:$0xff] }
 0x21a   :  { %2015 = vmatpush3.bf16.msra.mxu0 %v2012_v37 }
 0x21b   :  { %v1661_v7 = vpop.f32.mrb[10].mxu1  ;;  %1712 = vmatprep.mubr.f32.mxu0 %v435_v8  ;;  %2017 = vmatprep.subr.bf16.mxu0 %v2016_v58  ;;  %v809_v8 = vld [vmem:[#allocation2 + $0xe8] sm:$0xff] }
 0x21c   :  { %v444_v20 = vpop.f32.mrb[11].mxu1  ;;  %1713 = vmatmul.mubr.f32.gmra.mrb[24].mxu0 %v440_v12  ;;  %v450_v19 = vadd.f32 %v1661_v7, %v2642_v18  ;;  %v2028_v12 = vpack.c.bf16 %v809_v8, %v808_v13 }
 0x21d   :  { %v445_v15 = vadd.f32 %v444_v20, %v2638_v9 }
 0x21e   :  { %2019 = vmatpush3.bf16.msra.mxu0 %v2016_v58 }
 0x21f   :  { %v1664_v10 = vpop.f32.mrb[12].mxu1  ;;  %1715 = vmatprep.mubr.f32.mxu0 %v445_v15  ;;  %2021 = vmatprep.subr.bf16.mxu0 %v2020_v6 }
 0x220   :  { %v454_v27 = vpop.f32.mrb[13].mxu1  ;;  %1716 = vmatmul.mubr.f32.gmra.mrb[26].mxu0 %v450_v19  ;;  %v460_v26 = vadd.f32 %v1664_v10, %v2652_v25 }
 0x221   :  { %v455_v22 = vadd.f32 %v454_v27, %v2648_v14 }
 0x222   :  { %2023 = vmatpush3.bf16.msra.mxu0 %v2020_v6 }
 0x223   :  { %v1667_v21 = vpop.f32.mrb[14].mxu1  ;;  %1718 = vmatprep.mubr.f32.mxu0 %v455_v22  ;;  %2025 = vmatprep.subr.bf16.mxu0 %v2024_v39 }
 0x224   :  { %v464_v35 = vpop.f32.mrb[15].mxu1  ;;  %1719 = vmatmul.mubr.f32.gmra.mrb[28].mxu0 %v460_v26  ;;  %v470_v34 = vadd.f32 %v1667_v21, %v2662_v33 }
 0x225   :  { %v465_v30 = vadd.f32 %v464_v35, %v2658_v23 }
 0x226   :  { %2027 = vmatpush3.bf16.msra.mxu0 %v2024_v39 }
 0x227   :  { %1721 = vmatprep.mubr.f32.mxu0 %v465_v30  ;;  %2029 = vmatprep.subr.bf16.mxu0 %v2028_v12 }
 0x228   :  { %1722 = vmatmul.mubr.f32.gmra.mrb[30].mxu0 %v470_v34 }
 0x22a   :  { %2031 = vmatpush3.bf16.msra.mxu0 %v2028_v12 }
 0x2df   :  { %v1702_v7 = vpop.f32.mrb[16].mxu0 }
 0x2e0   :  { %v635_v20 = vmax.f32 %v1702_v7, 0.0  ;;  %v555_v15 = vpop.f32.mrb[17].mxu0 }
 0x2e1   :  { %v634_v19 = vmax.f32 %v555_v15, 0.0 }
 0x2e3   :  { %v1972_v10 = vpack.c.bf16 %v635_v20, %v634_v19  ;;  %v1705_v27 = vpop.f32.mrb[18].mxu0 }
 0x2e4   :  { %v637_v22 = vmax.f32 %v1705_v27, 0.0  ;;  %v565_v26 = vpop.f32.mrb[19].mxu0 }
 0x2e5   :  { %v636_v21 = vmax.f32 %v565_v26, 0.0  ;;  %1973 = vmatprep.subr.bf16.mxu1 %v1972_v10  ;;  %v981_v26 = vld [vmem:[#allocation5 + $0x40] sm:$0xff] }
 0x2e6   :  { %1975 = vmatpush3.bf16.msra.mxu1 %v1972_v10 }
 0x2e7   :  { %v1976_v35 = vpack.c.bf16 %v637_v22, %v636_v21  ;;  %v1708_v30 = vpop.f32.mrb[20].mxu0  ;;  %v982_v21 = vld [vmem:[#allocation5 + $0x48] sm:$0xff] }
 0x2e8   :  { %v639_v34 = vmax.f32 %v1708_v30, 0.0  ;;  %v575_v24 = vpop.f32.mrb[21].mxu0  ;;  %v983_v30 = vld [vmem:[#allocation5 + $0x50] sm:$0xff] }
 0x2e9   :  { %v638_v28 = vmax.f32 %v575_v24, 0.0  ;;  %1977 = vmatprep.subr.bf16.mxu1 %v1976_v35 }
 0x2ea   :  { %1979 = vmatpush3.bf16.msra.mxu1 %v1976_v35  ;;  %v2052_v35 = vpack.c.bf16 %v982_v21, %v981_v26 }
 0x2eb   :  { %v1980_v56 = vpack.c.bf16 %v639_v34, %v638_v28  ;;  %v1711_v52 = vpop.f32.mrb[22].mxu0  ;;  %v984_v34 = vld [vmem:[#allocation5 + $0x58] sm:$0xff]  ;;  %v985_v28 = vld [vmem:[#allocation5 + $0x60] sm:$0xff] }
 0x2ec   :  { %v641_v55 = vmax.f32 %v1711_v52, 0.0  ;;  %v585_v40 = vpop.f32.mrb[23].mxu0  ;;  %v2056_v24 = vpack.c.bf16 %v984_v34, %v983_v30 }
 0x2ed   :  { %v640_v42 = vmax.f32 %v585_v40, 0.0  ;;  %1981 = vmatprep.subr.bf16.mxu1 %v1980_v56 }
 0x2ee   :  { %1983 = vmatpush3.bf16.msra.mxu1 %v1980_v56  ;;  %v986_v56 = vld [vmem:[#allocation5 + $0x68] sm:$0xff] }
 0x2ef   :  { %v1984_v31 = vpack.c.bf16 %v641_v55, %v640_v42  ;;  %v1714_v37 = vpop.f32.mrb[24].mxu0  ;;  %v2060_v52 = vpack.c.bf16 %v986_v56, %v985_v28 }
 0x2f0   :  { %v643_v41 = vmax.f32 %v1714_v37, 0.0  ;;  %v595_v63 = vpop.f32.mrb[25].mxu0 }
 0x2f1   :  { %v642_v58 = vmax.f32 %v595_v63, 0.0  ;;  %1985 = vmatprep.subr.bf16.mxu1 %v1984_v31 }
 0x2f2   :  { %1987 = vmatpush3.bf16.msra.mxu1 %v1984_v31 }
 0x2f3   :  { %v1988_v62 = vpack.c.bf16 %v643_v41, %v642_v58  ;;  %v1717_v36 = vpop.f32.mrb[26].mxu0 }
 0x2f4   :  { %v645_v6 = vmax.f32 %v1717_v36, 0.0  ;;  %v605_v1 = vpop.f32.mrb[27].mxu0 }
 0x2f5   :  { %v644_v5 = vmax.f32 %v605_v1, 0.0  ;;  %1989 = vmatprep.subr.bf16.mxu1 %v1988_v62 }
 0x2f6   :  { %1991 = vmatpush3.bf16.msra.mxu1 %v1988_v62 }
 0x2f7   :  { %v1992_v39 = vpack.c.bf16 %v645_v6, %v644_v5  ;;  %v1720_v13 = vpop.f32.mrb[28].mxu0 }
 0x2f8   :  { %v647_v8 = vmax.f32 %v1720_v13, 0.0  ;;  %v615_v12 = vpop.f32.mrb[29].mxu0 }
 0x2f9   :  { %v646_v7 = vmax.f32 %v615_v12, 0.0  ;;  %1993 = vmatprep.subr.bf16.mxu1 %v1992_v39 }
 0x2fa   :  { %1995 = vmatpush3.bf16.msra.mxu1 %v1992_v39 }
 0x2fb   :  { %v1996_v20 = vpack.c.bf16 %v647_v8, %v646_v7  ;;  %v1723_v15 = vpop.f32.mrb[30].mxu0 }
 0x2fc   :  { %v649_v19 = vmax.f32 %v1723_v15, 0.0  ;;  %v625_v10 = vpop.f32.mrb[31].mxu0 }
 0x2fd   :  { %v648_v27 = vmax.f32 %v625_v10, 0.0  ;;  %1997 = vmatprep.subr.bf16.mxu1 %v1996_v20  ;;  %v988_v10 = vld [vmem:[#allocation5 + $0x78] sm:$0xff] }
 0x2fe   :  { %1999 = vmatpush3.bf16.msra.mxu1 %v1996_v20 }
 0x2ff   :  { %v2000_v22 = vpack.c.bf16 %v649_v19, %v648_v27  ;;  %v987_v19 = vld [vmem:[#allocation5 + $0x70] sm:$0xff] }
 0x300   :  { %v2064_v27 = vpack.c.bf16 %v988_v10, %v987_v19 }
 0x301   :  { %2001 = vmatprep.subr.bf16.mxu1 %v2000_v22 }
 0x302   :  { %2003 = vmatpush3.bf16.msra.mxu1 %v2000_v22 }
 0x305   :  { %1757 = vmatmul.mubr.f32.vlgmr.msra.gmra.mrb[16].mxu1 %v2498_v44  ;;  %v810_v44 = vld [vmem:[#allocation2 + $0xf0] sm:$0xff] }
 0x306   :  { %1759 = vmatprep.mubr.f32.mxu1 %v2503_v45  ;;  %v811_v45 = vld [vmem:[#allocation2 + $0xf8] sm:$0xff] }
 0x309   :  { %1760 = vmatmul.mubr.f32.gmra.mrb[18].mxu1 %v2510_v46  ;;  %v2032_v46 = vpack.c.bf16 %v811_v45, %v810_v44 }
 0x30a   :  { %1762 = vmatprep.mubr.f32.mxu1 %v2515_v47  ;;  %v973_v47 = vld [vmem:[#allocation5] sm:$0xff] }
 0x30b   :  { %2033 = vmatprep.subr.bf16.mxu0 %v2032_v46 }
 0x30c   :  { %2035 = vmatpush3.bf16.msra.mxu0 %v2032_v46 }
 0x30d   :  { %1763 = vmatmul.mubr.f32.gmra.mrb[20].mxu1 %v2522_v48  ;;  %v974_v48 = vld [vmem:[#allocation5 + $0x8] sm:$0xff] }
 0x30e   :  { %1765 = vmatprep.mubr.f32.mxu1 %v2527_v49  ;;  %v975_v49 = vld [vmem:[#allocation5 + $0x10] sm:$0xff] }
 0x311   :  { %1766 = vmatmul.mubr.f32.gmra.mrb[22].mxu1 %v2534_v50  ;;  %v2036_v50 = vpack.c.bf16 %v974_v48, %v973_v47 }
 0x312   :  { %1768 = vmatprep.mubr.f32.mxu1 %v2539_v51  ;;  %v976_v51 = vld [vmem:[#allocation5 + $0x18] sm:$0xff] }
 0x313   :  { %2037 = vmatprep.subr.bf16.mxu0 %v2036_v50  ;;  %2068 = vmatprep.subr.bf16.mxu1 %v2036_v50 }
 0x314   :  { %2076 = vmatpush3.bf16.msra.mxu1 %v2036_v50 }
 0x315   :  { %1769 = vmatmul.mubr.f32.gmra.mrb[24].mxu1 %v2546_v53  ;;  %v2040_v53 = vpack.c.bf16 %v976_v51, %v975_v49 }
 0x316   :  { %1771 = vmatprep.mubr.f32.mxu1 %v2551_v57  ;;  %v977_v57 = vld [vmem:[#allocation5 + $0x20] sm:$0xff] }
 0x317   :  { %2069 = vmatprep.subr.bf16.mxu1 %v2040_v53 }
 0x318   :  { %2077 = vmatpush3.bf16.msra.mxu1 %v2040_v53 }
 0x319   :  { %1772 = vmatmul.mubr.f32.gmra.mrb[26].mxu1 %v2558_v59  ;;  %v978_v59 = vld [vmem:[#allocation5 + $0x28] sm:$0xff] }
 0x31a   :  { %1774 = vmatprep.mubr.f32.mxu1 %v2563_v61  ;;  %v2044_v61 = vpack.c.bf16 %v978_v59, %v977_v57 }
 0x31c   :  { %2070 = vmatprep.subr.bf16.mxu1 %v2044_v61 }
 0x31d   :  { %1775 = vmatmul.mubr.f32.gmra.mrb[28].mxu1 %v2570_v0  ;;  %v979_v0 = vld [vmem:[#allocation5 + $0x30] sm:$0xff] }
 0x31e   :  { %1777 = vmatprep.mubr.f32.mxu1 %v2575_v2  ;;  %v980_v2 = vld [vmem:[#allocation5 + $0x38] sm:$0xff]  ;;  %2078 = vmatpush3.bf16.msra.mxu1 %v2044_v61 }
 0x321   :  { %1778 = vmatmul.mubr.f32.gmra.mrb[30].mxu1 %v2582_v3  ;;  %v2048_v3 = vpack.c.bf16 %v980_v2, %v979_v0 }
 0x323   :  { %2071 = vmatprep.subr.bf16.mxu1 %v2048_v3 }
 0x324   :  { %2079 = vmatpush3.bf16.msra.mxu1 %v2048_v3 }
 0x325   :  { %2072 = vmatprep.subr.bf16.mxu1 %v2052_v35 }
 0x328   :  { %2080 = vmatpush3.bf16.msra.mxu1 %v2052_v35 }
 0x329   :  { %2073 = vmatprep.subr.bf16.mxu1 %v2056_v24 }
 0x32c   :  { %2081 = vmatpush3.bf16.msra.mxu1 %v2056_v24 }
 0x32d   :  { %2074 = vmatprep.subr.bf16.mxu1 %v2060_v52 }
 0x330   :  { %2082 = vmatpush3.bf16.msra.mxu1 %v2060_v52 }
 0x331   :  { %2075 = vmatprep.subr.bf16.mxu1 %v2064_v27 }
 0x334   :  { %2083 = vmatpush3.bf16.msra.mxu1 %v2064_v27 }
 0x3d8   :  { %v1758_v55 = vpop.f32.mrb[16].mxu1 }
 0x3d9   :  { %v716_v40 = vpop.f32.mrb[17].mxu1  ;;  %v722_v31 = vadd.f32 %v1758_v55, %v2592_v17 }
 0x3da   :  { %v717_v42 = vadd.f32 %v716_v40, %v2588_v16 }
 0x3dc   :  { %v1761_v37 = vpop.f32.mrb[18].mxu1  ;;  %1812 = vmatprep.mubr.f32.mxu0 %v717_v42 }
 0x3dd   :  { %v726_v41 = vpop.f32.mrb[19].mxu1  ;;  %1813 = vmatmul.mubr.f32.vlgmr.msra.gmra.mrb[32].mxu0 %v722_v31  ;;  %v732_v58 = vadd.f32 %v1761_v37, %v2602_v54  ;;  %v1141_v31 = vlaneseq }
 0x3de   :  { %v727_v63 = vadd.f32 %v726_v41, %v2598_v29  ;;  %2039 = vmatpush3.bf16.msra.mxu0 %v2036_v50  ;;  %v1387_v41 = vld [vmem:[%s2900_s6] ss:$0 sm:$0xff]  ;;  %s2229_s6 = smov [#allocation7]  }
 0x3df   :  { %2041 = vmatprep.subr.bf16.mxu0 %v2040_v53  ;;  %v2697_v37 = vand.u32 127, %v1141_v31  ;;  %s1357_s5 = sshll.u32 %s2229_s6, 4  ;;  %s1358_s5 = int_to_ptr.vmem [resolvable:$true] %s1357_s5 }
 0x3e0   :  { %v1764_v62 = vpop.f32.mrb[20].mxu1  ;;  %1815 = vmatprep.mubr.f32.mxu0 %v727_v63  ;;  %s2197_s10 = scalar_lea.vmem %s1358_s5, 2048  ;;  %p2202_p3 = scmp.lt.s32.totalorder %s1358_s5, %s1358_s5 }
 0x3e1   :  { %v736_v36 = vpop.f32.mrb[21].mxu1  ;;  %1816 = vmatmul.mubr.f32.gmra.mrb[34].mxu0 %v732_v58  ;;  %v742_v16 = vadd.f32 %v1764_v62, %v2612_v60  ;;  %vm1143_vm1 = vcmp.lt.s32.totalorder %v2697_v37, 8  ;;  %p2198_p2 = scmp.ne.s32.totalorder %s1358_s5, %s2197_s10  ;;  %p2203_p4 = scmp.lt.s32.totalorder %s2197_s10, %s2197_s10 }
 0x3e2   :  { %v737_v6 = vadd.f32 %v736_v36, %v2608_v32  ;;  %2043 = vmatpush3.bf16.msra.mxu0 %v2040_v53 }
 0x3e3   :  { %2045 = vmatprep.subr.bf16.mxu0 %v2044_v61  ;;  %p2204_p5 = por %p2203_p4, %p2202_p3 }
 0x3e4   :  { %v1767_v17 = vpop.f32.mrb[22].mxu1  ;;  %1818 = vmatprep.mubr.f32.mxu0 %v737_v6 }
 0x3e5   :  { %v746_v1 = vpop.f32.mrb[23].mxu1  ;;  %1819 = vmatmul.mubr.f32.gmra.mrb[36].mxu0 %v742_v16  ;;  %v752_v54 = vadd.f32 %v1767_v17, %v2622_v4  ;;  %p2205_p6 = pnand %p2204_p5, %p2198_p2 }
 0x3e6   :  { %v747_v29 = vadd.f32 %v746_v1, %v2618_v38  ;;  %2047 = vmatpush3.bf16.msra.mxu0 %v2044_v61 }
 0x3e7   :  { %2049 = vmatprep.subr.bf16.mxu0 %v2048_v3 }
 0x3e8   :  { %v1770_v5 = vpop.f32.mrb[24].mxu1  ;;  %1821 = vmatprep.mubr.f32.mxu0 %v747_v29 }
 0x3e9   :  { %v756_v39 = vpop.f32.mrb[25].mxu1  ;;  %1822 = vmatmul.mubr.f32.gmra.mrb[38].mxu0 %v752_v54  ;;  %v762_v60 = vadd.f32 %v1770_v5, %v2632_v11 }
 0x3ea   :  { %v757_v32 = vadd.f32 %v756_v39, %v2628_v43  ;;  %2051 = vmatpush3.bf16.msra.mxu0 %v2048_v3 }
 0x3eb   :  { %2053 = vmatprep.subr.bf16.mxu0 %v2052_v35 }
 0x3ec   :  { %v1773_v13 = vpop.f32.mrb[26].mxu1  ;;  %1824 = vmatprep.mubr.f32.mxu0 %v757_v32 }
 0x3ed   :  { %v766_v8 = vpop.f32.mrb[27].mxu1  ;;  %1825 = vmatmul.mubr.f32.gmra.mrb[40].mxu0 %v762_v60  ;;  %v772_v4 = vadd.f32 %v1773_v13, %v2642_v18 }
 0x3ee   :  { %v767_v38 = vadd.f32 %v766_v8, %v2638_v9  ;;  %2055 = vmatpush3.bf16.msra.mxu0 %v2052_v35 }
 0x3ef   :  { %2057 = vmatprep.subr.bf16.mxu0 %v2056_v24 }
 0x3f0   :  { %v1776_v12 = vpop.f32.mrb[28].mxu1  ;;  %1827 = vmatprep.mubr.f32.mxu0 %v767_v38 }
 0x3f1   :  { %v776_v7 = vpop.f32.mrb[29].mxu1  ;;  %1828 = vmatmul.mubr.f32.gmra.mrb[42].mxu0 %v772_v4  ;;  %v782_v11 = vadd.f32 %v1776_v12, %v2652_v25 }
 0x3f2   :  { %v777_v43 = vadd.f32 %v776_v7, %v2648_v14  ;;  %2059 = vmatpush3.bf16.msra.mxu0 %v2056_v24 }
 0x3f3   :  { %2061 = vmatprep.subr.bf16.mxu0 %v2060_v52 }
 0x3f4   :  { %v1779_v20 = vpop.f32.mrb[30].mxu1  ;;  %1830 = vmatprep.mubr.f32.mxu0 %v777_v43 }
 0x3f5   :  { %v786_v15 = vpop.f32.mrb[31].mxu1  ;;  %1831 = vmatmul.mubr.f32.gmra.mrb[44].mxu0 %v782_v11  ;;  %v792_v18 = vadd.f32 %v1779_v20, %v2662_v33 }
 0x3f6   :  { %v787_v9 = vadd.f32 %v786_v15, %v2658_v23  ;;  %2063 = vmatpush3.bf16.msra.mxu0 %v2060_v52 }
 0x3f7   :  { %2065 = vmatprep.subr.bf16.mxu0 %v2064_v27 }
 0x3f8   :  { %1833 = vmatprep.mubr.f32.mxu0 %v787_v9 }
 0x3f9   :  { %1834 = vmatmul.mubr.f32.gmra.mrb[46].mxu0 %v792_v18 }
 0x3fa   :  { %2067 = vmatpush3.bf16.msra.mxu0 %v2064_v27 }
 0x4b0   :  { %v1814_v14 = vpop.f32.mrb[32].mxu0 }
 0x4b1   :  { %v878_v25 = vpop.f32.mrb[33].mxu0  ;;  %v958_v44 = vmax.f32 %v1814_v14, 0.0 }
 0x4b2   :  { %v957_v22 = vmax.f32 %v878_v25, 0.0 }
 0x4b4   :  { %v1817_v45 = vpop.f32.mrb[34].mxu0  ;;  %1868 = vmatprep.mubr.f32.mxu0 %v957_v22 }
 0x4b5   :  { %v888_v46 = vpop.f32.mrb[35].mxu0  ;;  %1869 = vmatmul.mubr.f32.vlgmr.msra.gmra.mrb[48].mxu0 %v958_v44  ;;  %v960_v47 = vmax.f32 %v1817_v45, 0.0 }
 0x4b6   :  { %v959_v23 = vmax.f32 %v888_v46, 0.0 }
 0x4b8   :  { %v1820_v33 = vpop.f32.mrb[36].mxu0  ;;  %1871 = vmatprep.mubr.f32.mxu0 %v959_v23 }
 0x4b9   :  { %v898_v48 = vpop.f32.mrb[37].mxu0  ;;  %1872 = vmatmul.mubr.f32.gmra.mrb[50].mxu0 %v960_v47  ;;  %v962_v50 = vmax.f32 %v1820_v33, 0.0 }
 0x4ba   :  { %v961_v49 = vmax.f32 %v898_v48, 0.0 }
 0x4bc   :  { %v1823_v51 = vpop.f32.mrb[38].mxu0  ;;  %1874 = vmatprep.mubr.f32.mxu1 %v961_v49 }
 0x4bd   :  { %v908_v53 = vpop.f32.mrb[39].mxu0  ;;  %1875 = vmatmul.mubr.f32.vlgmr.msra.gmra.mrb[32].mxu1 %v962_v50  ;;  %v964_v59 = vmax.f32 %v1823_v51, 0.0 }
 0x4be   :  { %v963_v57 = vmax.f32 %v908_v53, 0.0 }
 0x4c0   :  { %v1826_v61 = vpop.f32.mrb[40].mxu0  ;;  %1877 = vmatprep.mubr.f32.mxu1 %v963_v57 }
 0x4c1   :  { %v918_v0 = vpop.f32.mrb[41].mxu0  ;;  %1878 = vmatmul.mubr.f32.gmra.mrb[34].mxu1 %v964_v59  ;;  %v966_v3 = vmax.f32 %v1826_v61, 0.0 }
 0x4c2   :  { %v965_v2 = vmax.f32 %v918_v0, 0.0 }
 0x4c4   :  { %v1829_v26 = vpop.f32.mrb[42].mxu0  ;;  %1880 = vmatprep.mubr.f32.mxu1 %v965_v2 }
 0x4c5   :  { %v928_v21 = vpop.f32.mrb[43].mxu0  ;;  %1881 = vmatmul.mubr.f32.gmra.mrb[36].mxu1 %v966_v3  ;;  %v968_v30 = vmax.f32 %v1829_v26, 0.0 }
 0x4c6   :  { %v967_v35 = vmax.f32 %v928_v21, 0.0 }
 0x4c8   :  { %v1832_v34 = vpop.f32.mrb[44].mxu0  ;;  %1883 = vmatprep.mubr.f32.mxu1 %v967_v35 }
 0x4c9   :  { %v938_v24 = vpop.f32.mrb[45].mxu0  ;;  %1884 = vmatmul.mubr.f32.gmra.mrb[38].mxu1 %v968_v30  ;;  %v970_v56 = vmax.f32 %v1832_v34, 0.0 }
 0x4ca   :  { %v969_v28 = vmax.f32 %v938_v24, 0.0 }
 0x4cc   :  { %v1835_v52 = vpop.f32.mrb[46].mxu0  ;;  %1886 = vmatprep.mubr.f32.mxu1 %v969_v28 }
 0x4cd   :  { %v948_v55 = vpop.f32.mrb[47].mxu0  ;;  %1887 = vmatmul.mubr.f32.gmra.mrb[40].mxu1 %v970_v56  ;;  %v972_v42 = vmax.f32 %v1835_v52, 0.0 }
 0x4ce   :  { %v971_v40 = vmax.f32 %v948_v55, 0.0 }
 0x4d0   :  { %1889 = vmatprep.mubr.f32.mxu1 %v971_v40 }
 0x4d1   :  { %1890 = vmatmul.mubr.f32.gmra.mrb[42].mxu1 %v972_v42 }
 0x588   :  { %v1870_v63 = vpop.f32.mrb[48].mxu0 }
 0x589   :  { %v1068_v58 = vadd.f32 %v1870_v63, %v1387_v41  ;;  %v1062_v62 = vpop.f32.mrb[49].mxu0 }
 0x58a   :  { %v1063_v36 = vadd.f32 %v1387_v41, %v1062_v62 }
 0x58b   :  { %v2705_v6 = vsel %vm1143_vm1, %v1068_v58, -1e+30 }
 0x58c   :  { %1162 = vmax.xlane.f32.xlu0 %v2705_v6  ;;  %v1873_v16 = vpop.f32.mrb[50].mxu0  ;;  %v2714_v5 = vsel %vm1143_vm1, %v1063_v36, -1e+30 }
 0x58d   :  { %v1078_v17 = vadd.f32 %v1873_v16, %v1387_v41  ;;  %v1072_v1 = vpop.f32.mrb[51].mxu0 }
 0x58e   :  { %v1073_v29 = vadd.f32 %v1387_v41, %v1072_v1 }
 0x58f   :  { %v2710_v54 = vsel %vm1143_vm1, %v1078_v17, -1e+30 }
 0x590   :  { %v1876_v39 = vpop.f32.mrb[32].mxu1  ;;  %1166 = vmax.xlane.f32.xlu1 %v2710_v54  ;;  %1160 = vmax.xlane.f32.xlu0 %v2714_v5  ;;  %v2720_v8 = vsel %vm1143_vm1, %v1073_v29, -1e+30 }
 0x591   :  { %v1082_v32 = vpop.f32.mrb[33].mxu1  ;;  %v1088_v13 = vadd.f32 %v1876_v39, %v1387_v41 }
 0x592   :  { %v1083_v60 = vadd.f32 %v1387_v41, %v1082_v32 }
 0x593   :  { %v2730_v11 = vsel %vm1143_vm1, %v1088_v13, -1e+30 }
 0x594   :  { %v1879_v38 = vpop.f32.mrb[34].mxu1  ;;  %1164 = vmax.xlane.f32.xlu1 %v2720_v8  ;;  %v2725_v4 = vsel %vm1143_vm1, %v1083_v60, -1e+30 }
 0x595   :  { %v1092_v12 = vpop.f32.mrb[35].mxu1  ;;  %1168 = vmax.xlane.f32.xlu0 %v2725_v4  ;;  %v1098_v43 = vadd.f32 %v1879_v38, %v1387_v41 }
 0x596   :  { %v1093_v7 = vadd.f32 %v1387_v41, %v1092_v12 }
 0x597   :  { %v2740_v10 = vsel %vm1143_vm1, %v1098_v43, -1e+30 }
 0x598   :  { %v1882_v20 = vpop.f32.mrb[36].mxu1  ;;  %1170 = vmax.xlane.f32.xlu1 %v2730_v11  ;;  %v2735_v15 = vsel %vm1143_vm1, %v1093_v7, -1e+30 }
 0x599   :  { %v1102_v9 = vpop.f32.mrb[37].mxu1  ;;  %1172 = vmax.xlane.f32.xlu0 %v2735_v15  ;;  %v1108_v19 = vadd.f32 %v1882_v20, %v1387_v41 }
 0x59a   :  { %v1103_v18 = vadd.f32 %v1387_v41, %v1102_v9 }
 0x59b   :  { %v2750_v45 = vsel %vm1143_vm1, %v1108_v19, -1e+30 }
 0x59c   :  { %v1885_v27 = vpop.f32.mrb[38].mxu1  ;;  %1174 = vmax.xlane.f32.xlu1 %v2740_v10  ;;  %v2745_v14 = vsel %vm1143_vm1, %v1103_v18, -1e+30 }
 0x59d   :  { %v1112_v25 = vpop.f32.mrb[39].mxu1  ;;  %1176 = vmax.xlane.f32.xlu0 %v2745_v14  ;;  %v1118_v44 = vadd.f32 %v1885_v27, %v1387_v41 }
 0x59e   :  { %v1113_v22 = vadd.f32 %v1387_v41, %v1112_v25 }
 0x59f   :  { %v2760_v49 = vsel %vm1143_vm1, %v1118_v44, -1e+30 }
 0x5a0   :  { %v1888_v46 = vpop.f32.mrb[40].mxu1  ;;  %1178 = vmax.xlane.f32.xlu1 %v2750_v45  ;;  %v2755_v23 = vsel %vm1143_vm1, %v1113_v22, -1e+30 }
 0x5a1   :  { %v1122_v47 = vpop.f32.mrb[41].mxu1  ;;  %1180 = vmax.xlane.f32.xlu0 %v2755_v23  ;;  %v1128_v48 = vadd.f32 %v1888_v46, %v1387_v41 }
 0x5a2   :  { %v1123_v33 = vadd.f32 %v1387_v41, %v1122_v47 }
 0x5a3   :  { %v2770_v61 = vsel %vm1143_vm1, %v1128_v48, -1e+30 }
 0x5a4   :  { %1182 = vmax.xlane.f32.xlu1 %v2760_v49  ;;  %v1891_v50 = vpop.f32.mrb[42].mxu1  ;;  %v2765_v51 = vsel %vm1143_vm1, %v1123_v33, -1e+30 }
 0x5a5   :  { %1184 = vmax.xlane.f32.xlu0 %v2765_v51  ;;  %v1132_v53 = vpop.f32.mrb[43].mxu1  ;;  %v1138_v59 = vadd.f32 %v1891_v50, %v1387_v41 }
 0x5a6   :  { %v1133_v57 = vadd.f32 %v1387_v41, %v1132_v53 }
 0x5a7   :  { %v2780_v2 = vsel %vm1143_vm1, %v1138_v59, -1e+30 }
 0x5a8   :  { %1186 = vmax.xlane.f32.xlu1 %v2770_v61  ;;  %v2775_v0 = vsel %vm1143_vm1, %v1133_v57, -1e+30 }
 0x5a9   :  { %1188 = vmax.xlane.f32.xlu0 %v2775_v0 }
 0x5ac   :  { %1190 = vmax.xlane.f32.xlu1 %v2780_v2 }
 0x619   :  { %v2783_v3 = vpop.xlane.xlu0 %1162 }
 0x61a   :  { %v1193_v26 = vsub.f32 %v2705_v6, %v2783_v3 }
 0x61c   :  { %v1210_v21 = vmul.f32 1.442695, %v1193_v26 }
 0x61d   :  { %v2787_v35 = vpop.xlane.xlu1 %1166  ;;  %v2789_v30 = vpop.xlane.xlu0 %1160 }
 0x61e   :  { %2089 = vpow2.f32 %v1210_v21  ;;  %v1195_v34 = vsub.f32 %v2710_v54, %v2787_v35  ;;  %v1192_v24 = vsub.f32 %v2714_v5, %v2789_v30 }
 0x620   :  { %v1214_v28 = vmul.f32 1.442695, %v1195_v34  ;;  %v1208_v56 = vmul.f32 1.442695, %v1192_v24 }
 0x621   :  { %v2795_v52 = vpop.xlane.xlu1 %1164 }
 0x622   :  { %2091 = vpow2.f32 %v1214_v28  ;;  %v1194_v55 = vsub.f32 %v2720_v8, %v2795_v52  ;;  %v2799_v40 = vpop.xlane.xlu0 %1168 }
 0x623   :  { %2093 = vpow2.f32 %v1208_v56  ;;  %v1196_v42 = vsub.f32 %v2725_v4, %v2799_v40 }
 0x624   :  { %v1212_v31 = vmul.f32 1.442695, %v1194_v55 }
 0x625   :  { %v2803_v37 = vpop.xlane.xlu1 %1170  ;;  %v1216_v58 = vmul.f32 1.442695, %v1196_v42 }
 0x626   :  { %2095 = vpow2.f32 %v1212_v31  ;;  %v1197_v41 = vsub.f32 %v2730_v11, %v2803_v37  ;;  %v2807_v63 = vpop.xlane.xlu0 %1172 }
 0x627   :  { %v1198_v62 = vsub.f32 %v2735_v15, %v2807_v63 }
 0x628   :  { %v2090_v36 = vpop.eup %2089  ;;  %v1218_v16 = vmul.f32 1.442695, %v1197_v41 }
 0x629   :  { %v2811_v17 = vpop.xlane.xlu1 %1174  ;;  %1242 = vadd.xlane.f32.xlu1 %v2090_v36  ;;  %v1220_v39 = vmul.f32 1.442695, %v1198_v62 }
 0x62a   :  { %2097 = vpow2.f32 %v1218_v16  ;;  %v1199_v1 = vsub.f32 %v2740_v10, %v2811_v17  ;;  %v2815_v29 = vpop.xlane.xlu0 %1176 }
 0x62b   :  { %2099 = vpow2.f32 %v1216_v58  ;;  %v1200_v32 = vsub.f32 %v2745_v14, %v2815_v29 }
 0x62c   :  { %v2092_v60 = vpop.eup %2091  ;;  %v1222_v13 = vmul.f32 1.442695, %v1199_v1 }
 0x62d   :  { %v2094_v38 = vpop.eup %2093  ;;  %v2819_v12 = vpop.xlane.xlu1 %1178  ;;  %1246 = vadd.xlane.f32.xlu1 %v2092_v60  ;;  %v1224_v20 = vmul.f32 1.442695, %v1200_v32 }
 0x62e   :  { %2101 = vpow2.f32 %v1222_v13  ;;  %v1201_v7 = vsub.f32 %v2750_v45, %v2819_v12  ;;  %1240 = vadd.xlane.f32.xlu0 %v2094_v38  ;;  %v2823_v43 = vpop.xlane.xlu0 %1180 }
 0x62f   :  { %2103 = vpow2.f32 %v1220_v39  ;;  %v1202_v9 = vsub.f32 %v2755_v23, %v2823_v43 }
 0x630   :  { %v2096_v18 = vpop.eup %2095  ;;  %v1226_v19 = vmul.f32 1.442695, %v1201_v7 }
 0x631   :  { %v2827_v27 = vpop.xlane.xlu1 %1182  ;;  %v1228_v44 = vmul.f32 1.442695, %v1202_v9 }
 0x632   :  { %2105 = vpow2.f32 %v1226_v19  ;;  %v1203_v25 = vsub.f32 %v2760_v49, %v2827_v27  ;;  %1244 = vadd.xlane.f32.xlu0 %v2096_v18  ;;  %v2831_v22 = vpop.xlane.xlu0 %1184 }
 0x633   :  { %2107 = vpow2.f32 %v1224_v20  ;;  %v1204_v46 = vsub.f32 %v2765_v51, %v2831_v22 }
 0x634   :  { %v2098_v47 = vpop.eup %2097  ;;  %v1230_v33 = vmul.f32 1.442695, %v1203_v25 }
 0x635   :  { %v2100_v48 = vpop.eup %2099  ;;  %v2835_v50 = vpop.xlane.xlu1 %1186  ;;  %1250 = vadd.xlane.f32.xlu1 %v2098_v47  ;;  %v1232_v59 = vmul.f32 1.442695, %v1204_v46 }
 0x636   :  { %2109 = vpow2.f32 %v1230_v33  ;;  %v1205_v53 = vsub.f32 %v2770_v61, %v2835_v50  ;;  %1248 = vadd.xlane.f32.xlu0 %v2100_v48  ;;  %v2839_v57 = vpop.xlane.xlu0 %1188 }
 0x637   :  { %2111 = vpow2.f32 %v1228_v44  ;;  %v1206_v26 = vsub.f32 %v2775_v0, %v2839_v57 }
 0x638   :  { %v2102_v21 = vpop.eup %2101  ;;  %v1234_v34 = vmul.f32 1.442695, %v1205_v53 }
 0x639   :  { %v2104_v24 = vpop.eup %2103  ;;  %1254 = vadd.xlane.f32.xlu1 %v2102_v21  ;;  %v2843_v28 = vpop.xlane.xlu1 %1190  ;;  %v1236_v55 = vmul.f32 1.442695, %v1206_v26 }
 0x63a   :  { %2113 = vpow2.f32 %v1234_v34  ;;  %v1207_v56 = vsub.f32 %v2780_v2, %v2843_v28  ;;  %1252 = vadd.xlane.f32.xlu0 %v2104_v24 }
 0x63b   :  { %2115 = vpow2.f32 %v1232_v59 }
 0x63c   :  { %v2106_v42 = vpop.eup %2105  ;;  %v1238_v31 = vmul.f32 1.442695, %v1207_v56 }
 0x63d   :  { %v2108_v41 = vpop.eup %2107  ;;  %1258 = vadd.xlane.f32.xlu1 %v2106_v42 }
 0x63e   :  { %2117 = vpow2.f32 %v1238_v31  ;;  %1256 = vadd.xlane.f32.xlu0 %v2108_v41 }
 0x63f   :  { %2119 = vpow2.f32 %v1236_v55 }
 0x640   :  { %v2110_v58 = vpop.eup %2109 }
 0x641   :  { %v2112_v62 = vpop.eup %2111  ;;  %1262 = vadd.xlane.f32.xlu1 %v2110_v58 }
 0x642   :  { %1260 = vadd.xlane.f32.xlu0 %v2112_v62 }
 0x644   :  { %v2114_v36 = vpop.eup %2113 }
 0x645   :  { %v2116_v16 = vpop.eup %2115  ;;  %1266 = vadd.xlane.f32.xlu1 %v2114_v36 }
 0x646   :  { %1264 = vadd.xlane.f32.xlu0 %v2116_v16 }
 0x648   :  { %v2118_v1 = vpop.eup %2117 }
 0x649   :  { %v2120_v39 = vpop.eup %2119  ;;  %1270 = vadd.xlane.f32.xlu1 %v2118_v1 }
 0x64a   :  { %1268 = vadd.xlane.f32.xlu0 %v2120_v39 }
 0x6b6   :  { %v1243_v32 = vpop.xlane.xlu1 %1242 }
 0x6b7   :  { %2121 = vlog2.f32 %v1243_v32 }
 0x6ba   :  { %v1247_v60 = vpop.xlane.xlu1 %1246 }
 0x6bb   :  { %2123 = vlog2.f32 %v1247_v60  ;;  %v1241_v13 = vpop.xlane.xlu0 %1240 }
 0x6bc   :  { %2125 = vlog2.f32 %v1241_v13 }
 0x6bf   :  { %v1245_v38 = vpop.xlane.xlu0 %1244 }
 0x6c0   :  { %2127 = vlog2.f32 %v1245_v38 }
 0x6c1   :  { %v2122_v7 = vpop.eup %2121 }
 0x6c2   :  { %v1275_v20 = vmul.f32 0.6931472, %v2122_v7  ;;  %v1251_v9 = vpop.xlane.xlu1 %1250 }
 0x6c3   :  { %2129 = vlog2.f32 %v1251_v9  ;;  %v1249_v18 = vpop.xlane.xlu0 %1248 }
 0x6c4   :  { %v1305_v19 = vadd.f32 %v1275_v20, %v2783_v3  ;;  %2131 = vlog2.f32 %v1249_v18 }
 0x6c5   :  { %v2124_v25 = vpop.eup %2123 }
 0x6c6   :  { %v2126_v44 = vpop.eup %2125  ;;  %v1321_v46 = vsub.f32 %v2705_v6, %v1305_v19  ;;  %v1279_v47 = vmul.f32 0.6931472, %v2124_v25  ;;  %v1255_v33 = vpop.xlane.xlu1 %1254 }
 0x6c7   :  { %v1273_v48 = vmul.f32 0.6931472, %v2126_v44  ;;  %2133 = vlog2.f32 %v1255_v33  ;;  %v1253_v53 = vpop.xlane.xlu0 %1252 }
 0x6c8   :  { %1337 = vst [vmem:[#allocation7 + $0x8] sm:$0xff] %v1321_v46  ;;  %v1307_v59 = vadd.f32 %v1279_v47, %v2787_v35  ;;  %2135 = vlog2.f32 %v1253_v53 }
 0x6c9   :  { %v1304_v26 = vadd.f32 %v1273_v48, %v2789_v30 }
 0x6ca   :  { %v2128_v21 = vpop.eup %2127  ;;  %v1323_v34 = vsub.f32 %v2710_v54, %v1307_v59  ;;  %v1259_v3 = vpop.xlane.xlu1 %1258 }
 0x6cb   :  { %v1320_v24 = vsub.f32 %v2714_v5, %v1304_v26  ;;  %v1277_v56 = vmul.f32 0.6931472, %v2128_v21  ;;  %2137 = vlog2.f32 %v1259_v3  ;;  %v1257_v6 = vpop.xlane.xlu0 %1256 }
 0x6cc   :  { %1339 = vst [vmem:[#allocation7 + $0x18] sm:$0xff] %v1323_v34  ;;  %2139 = vlog2.f32 %v1257_v6 }
 0x6cd   :  { %v2130_v55 = vpop.eup %2129  ;;  %1336 = vst [vmem:[#allocation7] sm:$0xff] %v1320_v24  ;;  %v1306_v42 = vadd.f32 %v1277_v56, %v2795_v52 }
 0x6ce   :  { %v2132_v31 = vpop.eup %2131  ;;  %v1283_v35 = vmul.f32 0.6931472, %v2130_v55  ;;  %v1263_v41 = vpop.xlane.xlu1 %1262 }
 0x6cf   :  { %v1322_v30 = vsub.f32 %v2720_v8, %v1306_v42  ;;  %v1281_v58 = vmul.f32 0.6931472, %v2132_v31  ;;  %2141 = vlog2.f32 %v1263_v41  ;;  %v1261_v54 = vpop.xlane.xlu0 %1260 }
 0x6d0   :  { %v1309_v62 = vadd.f32 %v1283_v35, %v2803_v37  ;;  %2143 = vlog2.f32 %v1261_v54 }
 0x6d1   :  { %v2134_v5 = vpop.eup %2133  ;;  %1338 = vst [vmem:[#allocation7 + $0x10] sm:$0xff] %v1322_v30  ;;  %v1308_v36 = vadd.f32 %v1281_v58, %v2799_v40 }
 0x6d2   :  { %v2136_v16 = vpop.eup %2135  ;;  %v1325_v1 = vsub.f32 %v2730_v11, %v1309_v62  ;;  %v1287_v39 = vmul.f32 0.6931472, %v2134_v5  ;;  %v1267_v52 = vpop.xlane.xlu1 %1266 }
 0x6d3   :  { %v1324_v32 = vsub.f32 %v2725_v4, %v1308_v36  ;;  %v1285_v60 = vmul.f32 0.6931472, %v2136_v16  ;;  %2145 = vlog2.f32 %v1267_v52  ;;  %v1265_v8 = vpop.xlane.xlu0 %1264 }
 0x6d4   :  { %1341 = vst [vmem:[#allocation7 + $0x28] sm:$0xff] %v1325_v1  ;;  %v1311_v13 = vadd.f32 %v1287_v39, %v2811_v17  ;;  %2147 = vlog2.f32 %v1265_v8 }
 0x6d5   :  { %v2138_v37 = vpop.eup %2137  ;;  %1340 = vst [vmem:[#allocation7 + $0x20] sm:$0xff] %v1324_v32  ;;  %v1310_v38 = vadd.f32 %v1285_v60, %v2807_v63 }
 0x6d6   :  { %v2140_v7 = vpop.eup %2139  ;;  %v1327_v40 = vsub.f32 %v2740_v10, %v1311_v13  ;;  %v1291_v20 = vmul.f32 0.6931472, %v2138_v37  ;;  %v1271_v11 = vpop.xlane.xlu1 %1270 }
 0x6d7   :  { %v1326_v9 = vsub.f32 %v2735_v15, %v1310_v38  ;;  %v1289_v18 = vmul.f32 0.6931472, %v2140_v7  ;;  %2149 = vlog2.f32 %v1271_v11  ;;  %v1269_v4 = vpop.xlane.xlu0 %1268 }
 0x6d8   :  { %1343 = vst [vmem:[#allocation7 + $0x38] sm:$0xff] %v1327_v40  ;;  %v1313_v19 = vadd.f32 %v1291_v20, %v2819_v12  ;;  %2151 = vlog2.f32 %v1269_v4 }
 0x6d9   :  { %v2142_v17 = vpop.eup %2141  ;;  %1342 = vst [vmem:[#allocation7 + $0x30] sm:$0xff] %v1326_v9  ;;  %v1312_v25 = vadd.f32 %v1289_v18, %v2815_v29 }
 0x6da   :  { %v2144_v44 = vpop.eup %2143  ;;  %v1329_v63 = vsub.f32 %v2750_v45, %v1313_v19  ;;  %v1295_v46 = vmul.f32 0.6931472, %v2142_v17 }
 0x6db   :  { %v1328_v10 = vsub.f32 %v2745_v14, %v1312_v25  ;;  %v1293_v47 = vmul.f32 0.6931472, %v2144_v44 }
 0x6dc   :  { %1345 = vst [vmem:[#allocation7 + $0x48] sm:$0xff] %v1329_v63  ;;  %v1315_v15 = vadd.f32 %v1295_v46, %v2827_v27 }
 0x6dd   :  { %v2146_v33 = vpop.eup %2145  ;;  %1344 = vst [vmem:[#allocation7 + $0x40] sm:$0xff] %v1328_v10  ;;  %v1314_v48 = vadd.f32 %v1293_v47, %v2823_v43 }
 0x6de   :  { %v2148_v12 = vpop.eup %2147  ;;  %v1331_v53 = vsub.f32 %v2760_v49, %v1315_v15  ;;  %v1299_v59 = vmul.f32 0.6931472, %v2146_v33 }
 0x6df   :  { %v1330_v29 = vsub.f32 %v2755_v23, %v1314_v48  ;;  %v1297_v26 = vmul.f32 0.6931472, %v2148_v12 }
 0x6e0   :  { %1347 = vst [vmem:[#allocation7 + $0x58] sm:$0xff] %v1331_v53  ;;  %v1317_v45 = vadd.f32 %v1299_v59, %v2835_v50 }
 0x6e1   :  { %v2150_v21 = vpop.eup %2149  ;;  %1346 = vst [vmem:[#allocation7 + $0x50] sm:$0xff] %v1330_v29  ;;  %v1316_v14 = vadd.f32 %v1297_v26, %v2831_v22 }
 0x6e2   :  { %v2152_v34 = vpop.eup %2151  ;;  %v1333_v27 = vsub.f32 %v2770_v61, %v1317_v45  ;;  %v1303_v3 = vmul.f32 0.6931472, %v2150_v21 }
 0x6e3   :  { %v1332_v43 = vsub.f32 %v2765_v51, %v1316_v14  ;;  %v1301_v24 = vmul.f32 0.6931472, %v2152_v34 }
 0x6e4   :  { %1349 = vst [vmem:[#allocation7 + $0x68] sm:$0xff] %v1333_v27  ;;  %v1319_v49 = vadd.f32 %v1303_v3, %v2843_v28 }
 0x6e5   :  { %1348 = vst [vmem:[#allocation7 + $0x60] sm:$0xff] %v1332_v43  ;;  %v1318_v23 = vadd.f32 %v1301_v24, %v2839_v57 }
 0x6e6   :  { %v1335_v50 = vsub.f32 %v2780_v2, %v1319_v49 }
 0x6e7   :  { %v1334_v56 = vsub.f32 %v2775_v0, %v1318_v23 }
 0x6e8   :  { %1351 = vst [vmem:[#allocation7 + $0x78] sm:$0xff] %v1335_v50 }
 0x6e9   :  { %1350 = vst [vmem:[#allocation7 + $0x70] sm:$0xff] %v1334_v56 }
 0x6ea   :  { %2208 = shalt.err (!%p2205_p6)
}
 0x6eb   :  { %s2209_s15 = scalar_lea.hbm %s2901_s7, 2048 }
 0x6ec   :  { %p2210_p7 = scmp.ne.s32.totalorder %s2901_s7, %s2209_s15  ;;  %p2213_p8 = scmp.lt.u32.totalorder %s2209_s15, %s2901_s7 }
 0x6ee   :  { %p2215_p9 = pnand %p2213_p8, %p2210_p7 }
 0x6f0   :  { %2218 = shalt.err (!%p2215_p9)
}
 0x6f1   :  { %1363 = dma.vmem_to_hbm [thread:$0]  %s1358_s5, 2048, %s2901_s7, [#allocation4], %s2226_s11, %s2226_s11, %s2227_s12  }
 0x6f2   :  { %2223 = dma.done.wait [#allocation4], 2048  }
 0x6f3   :  { %2224 = vsyncadd [#allocation4], 4294965248 }
 0x6f4   :  { %1367 = vsyncpa [#allocation3], 1 }
 0x6f5   :  { %1368 = vsyncpa [#allocation6], 1 }
 0x6f6   :  { %1369 = vsyncpa [#allocation4], 1 }

</bundles_post_ra>
